<compile_context>
chip_gen: v7x
topology: tpu7x:2x2x1
jax: 0.10.0
libtpu: 0.0.40
codegen_flags: <defaults>
</compile_context>

<pallas_src>
import functools

import jax
import jax.numpy as jnp
from jax.experimental import pallas as pl
from jax.experimental.pallas import tpu as pltpu

NUM_GROUPS = 32            # nn.GroupNorm(32, channels)
EPS = 1e-5                 # PyTorch GroupNorm default eps


def _vmem_limit_bytes():
    """Generation-aware VMEM request: headroom on v7x (64 MiB physical),
    ~100 MiB on v5e/v6e (128 MiB physical)."""
    try:
        cap = int(pltpu.get_tpu_info().vmem_capacity_bytes)
    except Exception:
        cap = 128 * 1024 * 1024
    return min(int(cap * 0.8), 100 * 1024 * 1024)


# --------------------------------------------------------------------------
# Kernel 1: fused (per-channel) GroupNorm affine + QKV projection
#   grid = (N, HW // th); each step handles a (th, C_pad) token tile.
# --------------------------------------------------------------------------
def _norm_qkv_kernel(x_ref, scale_ref, shift_ref,
                     wq_ref, wk_ref, wv_ref, bq_ref, bk_ref, bv_ref,
                     q_ref, k_ref, v_ref):
    # GroupNorm collapses to one fused multiply-add: scale/shift already hold
    # gamma*rsqrt(var+eps) and beta - mean*scale per (batch, channel).
    xn = (x_ref[0] * scale_ref[0] + shift_ref[0]).astype(jnp.bfloat16)  # (th, C_pad)

    # Three separate bf16 MXU dots with f32 accumulation; no (th, 3C) temp.
    # Wq / bq were pre-scaled by 1/sqrt(C) in the wrapper.
    q_ref[0] = (jnp.dot(xn, wq_ref[...], preferred_element_type=jnp.float32)
                + bq_ref[...]).astype(jnp.bfloat16)
    k_ref[0] = (jnp.dot(xn, wk_ref[...], preferred_element_type=jnp.float32)
                + bk_ref[...]).astype(jnp.bfloat16)
    v_ref[0] = (jnp.dot(xn, wv_ref[...], preferred_element_type=jnp.float32)
                + bv_ref[...]).astype(jnp.bfloat16)


# --------------------------------------------------------------------------
# Kernel 2: flash attention + output projection + residual
#   grid = (batch, q_tile, kv_tile); kv axis innermost reduction.
#   K / V are VMEM-resident per batch (kv_resident=True) and the current kv
#   tile is sliced with pl.ds, so HBM sees K/V exactly once per batch.
# --------------------------------------------------------------------------
def _flash_attn_kernel(q_ref, k_ref, v_ref, x_ref, wo_ref, bo_ref,
                       o_ref, m_sc, l_sc, acc_sc, *, tk, kv_resident):
    ki = pl.program_id(2)

    @pl.when(ki == 0)
    def _():
        m_sc[...] = jnp.full(m_sc.shape, -jnp.inf, jnp.float32)
        l_sc[...] = jnp.zeros_like(l_sc)
        acc_sc[...] = jnp.zeros_like(acc_sc)

    q = q_ref[0]                                        # (tq, C_pad) bf16, pre-scaled
    if kv_resident:
        start = pl.multiple_of(ki * tk, tk)
        k = k_ref[0, pl.ds(start, tk), :]               # (tk, C_pad) bf16
        v = v_ref[0, pl.ds(start, tk), :]
    else:
        k = k_ref[0]
        v = v_ref[0]

    s = jax.lax.dot_general(q, k, (((1,), (1,)), ((), ())),
                            preferred_element_type=jnp.float32)          # (tq, tk)

    m_prev = m_sc[...]                                                   # (tq, 1)
    m_new = jnp.maximum(m_prev, jnp.max(s, axis=-1, keepdims=True))
    alpha = jnp.exp(m_prev - m_new)
    p = jnp.exp(s - m_new)                                               # (tq, tk) f32

    l_sc[...] = alpha * l_sc[...] + jnp.sum(p, axis=-1, keepdims=True)
    acc_sc[...] = alpha * acc_sc[...] + jnp.dot(
        p.astype(jnp.bfloat16), v, preferred_element_type=jnp.float32)
    m_sc[...] = m_new

    @pl.when(ki == pl.num_programs(2) - 1)
    def _():
        # deferred softmax normalization: one approx-reciprocal on (tq, 1),
        # applied to the (tq, C) accumulator instead of the (tq, HW) scores.
        inv_l = pl.reciprocal(l_sc[...], approx=True)
        attn = (acc_sc[...] * inv_l).astype(jnp.bfloat16)                # (tq, C_pad)
        out = jnp.dot(attn, wo_ref[...], preferred_element_type=jnp.float32)
        o_ref[0] = (out + bo_ref[...] + x_ref[0]).astype(o_ref.dtype)    # + residual


# --------------------------------------------------------------------------
# Tile pickers (budget-aware, biggest tile that fits the VMEM request)
# --------------------------------------------------------------------------
def _pick_norm_tile(hw, c_pad, vmem_limit):
    for t in (1024, 512, 256, 128):
        if hw % t:
            continue
        need = (2 * t * c_pad * 4                 # x tile, f32, double-buffered
                + 3 * 2 * t * c_pad * 2           # q/k/v out tiles, bf16, x2 bufs
                + 3 * 2 * c_pad * c_pad * 2       # Wq/Wk/Wv bf16, x2 bufs
                + 3 * t * c_pad * 4)              # f32 dot temps
        if need <= int(vmem_limit * 0.7):
            return t
    return hw   # full extent (hw < 128 or not 128-divisible)


def _pick_flash_tile(hw, c_pad, vmem_limit, kv_resident):
    kv_cost = (2 * 2 * hw * c_pad * 2) if kv_resident else 0
    for t in (1024, 512, 256, 128):
        if hw % t:
            continue
        kv_stream = 0 if kv_resident else 2 * 2 * t * c_pad * 2
        need = (kv_cost + kv_stream
                + 2 * t * c_pad * 2               # q blocks (bf16, x2 bufs)
                + 2 * t * c_pad * 4               # residual x blocks
                + 2 * t * c_pad * 4               # out blocks
                + t * c_pad * 4                   # acc scratch
                + 2 * t * t * 4                   # s / p temps
                + 2 * c_pad * c_pad * 2)          # Wo
        if need <= int(vmem_limit * 0.7):
            return t
    return hw


# --------------------------------------------------------------------------
# Wrapper
# --------------------------------------------------------------------------
def attention_block(x_nchw, params):
    """Pallas implementation of AttentionBlock.forward for NCHW float32 input."""
    gamma, beta, wq, bq, wk, bk, wv, bv, wo, bo = params
    n, c, h, w = x_nchw.shape
    assert c % NUM_GROUPS == 0, "GroupNorm(32, C) requires C % 32 == 0"
    hw = h * w
    cg = c // NUM_GROUPS
    vmem_limit = _vmem_limit_bytes()

    # lane-dense channel padding (zero pad -> padded channels stay 0 end-to-end)
    c_pad = ((c + 127) // 128) * 128
    pad_c = c_pad - c

    # ---- GroupNorm statistics: cheap XLA reduction per (batch, group), folded
    # into per-(batch, channel) scale / shift so the kernels need no cross-tile
    # reduction and kernel 1 can be tiled over HW.
    xg = x_nchw.reshape(n, NUM_GROUPS, cg * h * w)
    mean_g = jnp.mean(xg, axis=2, keepdims=True)                        # (N, G, 1)
    var_g = jnp.mean(jnp.square(xg - mean_g), axis=2, keepdims=True)    # (N, G, 1)
    mean_c = jnp.repeat(mean_g[:, :, 0], cg, axis=1)                    # (N, C)
    var_c = jnp.repeat(var_g[:, :, 0], cg, axis=1)                      # (N, C)
    scale_c = gamma * jax.lax.rsqrt(var_c + EPS)                        # (N, C)
    shift_c = beta - mean_c * scale_c                                   # (N, C)

    # ---- layout glue: NCHW -> (N, HW, C_pad) token-major ----
    # TODO(synk): fuse this transpose/pad (and the inverse) into the kernels
    # (native (1, C_pad, th) blocks + in-kernel XLU transpose) to save two full
    # HBM passes over the activations.
    x_tok = x_nchw.reshape(n, c, hw).transpose(0, 2, 1)
    if pad_c:
        x_tok = jnp.pad(x_tok, ((0, 0), (0, 0), (0, pad_c)))

    def pad_last(a):     # (..., C) -> (..., C_pad), zeros
        return jnp.pad(a, ((0, 0), (0, pad_c))) if pad_c else a

    def pad_mat(m):      # (C, C) -> (C_pad, C_pad), zeros
        return jnp.pad(m, ((0, pad_c), (0, pad_c))) if pad_c else m

    scale_nc = pad_last(scale_c).reshape(n, 1, c_pad)
    shift_nc = pad_last(shift_c).reshape(n, 1, c_pad)

    # fold the 1/sqrt(C) attention scale into Wq / bq (weight-side const fold,
    # done on the f32 weights before the bf16 cast)
    inv_sqrt_c = 1.0 / (float(c) ** 0.5)
    wq_bf = pad_mat(wq * inv_sqrt_c).astype(jnp.bfloat16)
    wk_bf = pad_mat(wk).astype(jnp.bfloat16)
    wv_bf = pad_mat(wv).astype(jnp.bfloat16)
    wo_bf = pad_mat(wo).astype(jnp.bfloat16)
    bq_p = pad_last(bq * inv_sqrt_c)
    bk_p = pad_last(bk)
    bv_p = pad_last(bv)
    bo_p = pad_last(bo)

    # ---- kernel 1: tiled normalize + fused QKV ----
    th = _pick_norm_tile(hw, c_pad, vmem_limit)
    nt = hw // th
    qkv_shape = jax.ShapeDtypeStruct((n, hw, c_pad), jnp.bfloat16)
    q_t, k_t, v_t = pl.pallas_call(
        _norm_qkv_kernel,
        out_shape=(qkv_shape, qkv_shape, qkv_shape),
        grid_spec=pltpu.PrefetchScalarGridSpec(
            num_scalar_prefetch=0,
            grid=(n, nt),
            in_specs=[
                pl.BlockSpec((1, th, c_pad), lambda b, t: (b, t, 0)),    # x
                pl.BlockSpec((1, 1, c_pad), lambda b, t: (b, 0, 0)),     # scale
                pl.BlockSpec((1, 1, c_pad), lambda b, t: (b, 0, 0)),     # shift
                pl.BlockSpec((c_pad, c_pad), lambda b, t: (0, 0)),       # Wq
                pl.BlockSpec((c_pad, c_pad), lambda b, t: (0, 0)),       # Wk
                pl.BlockSpec((c_pad, c_pad), lambda b, t: (0, 0)),       # Wv
                pl.BlockSpec((1, c_pad), lambda b, t: (0, 0)),           # bq
                pl.BlockSpec((1, c_pad), lambda b, t: (0, 0)),           # bk
                pl.BlockSpec((1, c_pad), lambda b, t: (0, 0)),           # bv
            ],
            out_specs=[
                pl.BlockSpec((1, th, c_pad), lambda b, t: (b, t, 0)),
                pl.BlockSpec((1, th, c_pad), lambda b, t: (b, t, 0)),
                pl.BlockSpec((1, th, c_pad), lambda b, t: (b, t, 0)),
            ],
        ),
        compiler_params=pltpu.CompilerParams(
            dimension_semantics=("parallel", "parallel"),
            vmem_limit_bytes=vmem_limit),
    )(x_tok, scale_nc, shift_nc, wq_bf, wk_bf, wv_bf, bq_p, bk_p, bv_p)

    # ---- kernel 2: flash attention + Wo + residual ----
    # Keep K / V VMEM-resident per batch when they fit (constant index_map ->
    # fetched from HBM once per batch instead of once per q tile).
    kv_resident = (2 * 2 * hw * c_pad * 2) <= int(vmem_limit * 0.5)
    tq = _pick_flash_tile(hw, c_pad, vmem_limit, kv_resident)
    tk = tq
    nq, nk = hw // tq, hw // tk

    if kv_resident:
        k_spec = pl.BlockSpec((1, hw, c_pad), lambda b, qi, ki: (b, 0, 0))
        v_spec = pl.BlockSpec((1, hw, c_pad), lambda b, qi, ki: (b, 0, 0))
    else:
        k_spec = pl.BlockSpec((1, tk, c_pad), lambda b, qi, ki: (b, ki, 0))
        v_spec = pl.BlockSpec((1, tk, c_pad), lambda b, qi, ki: (b, ki, 0))

    out_tok = pl.pallas_call(
        functools.partial(_flash_attn_kernel, tk=tk, kv_resident=kv_resident),
        out_shape=jax.ShapeDtypeStruct((n, hw, c_pad), x_tok.dtype),
        grid_spec=pltpu.PrefetchScalarGridSpec(
            num_scalar_prefetch=0,
            grid=(n, nq, nk),
            in_specs=[
                pl.BlockSpec((1, tq, c_pad), lambda b, qi, ki: (b, qi, 0)),  # q
                k_spec,                                                      # k (resident)
                v_spec,                                                      # v (resident)
                pl.BlockSpec((1, tq, c_pad), lambda b, qi, ki: (b, qi, 0)),  # residual x
                pl.BlockSpec((c_pad, c_pad), lambda b, qi, ki: (0, 0)),      # Wo
                pl.BlockSpec((1, c_pad), lambda b, qi, ki: (0, 0)),          # bo
            ],
            out_specs=pl.BlockSpec((1, tq, c_pad), lambda b, qi, ki: (b, qi, 0)),
            scratch_shapes=[
                pltpu.VMEM((tq, 1), jnp.float32),       # running max
                pltpu.VMEM((tq, 1), jnp.float32),       # running denominator
                pltpu.VMEM((tq, c_pad), jnp.float32),   # output accumulator
            ],
        ),
        compiler_params=pltpu.CompilerParams(
            dimension_semantics=("parallel", "parallel", "arbitrary"),
            vmem_limit_bytes=vmem_limit),
    )(q_t, k_t, v_t, x_tok, wo_bf, bo_p)

    if pad_c:
        out_tok = out_tok[:, :, :c]
    return out_tok.transpose(0, 2, 1).reshape(n, c, h, w)


# --------------------------------------------------------------------------
# Pure-JAX reference (PyTorch semantics, all f32)
# --------------------------------------------------------------------------
def ref_forward(x, params):
    gamma, beta, wq, bq, wk, bk, wv, bv, wo, bo = params
    n, c, h, w = x.shape
    cg = c // NUM_GROUPS
    xg = x.reshape(n, NUM_GROUPS, cg, h, w)
    mean = xg.mean(axis=(2, 3, 4), keepdims=True)
    var = ((xg - mean) ** 2).mean(axis=(2, 3, 4), keepdims=True)
    xn = (xg - mean) / jnp.sqrt(var + EPS)
    xn = xn.reshape(n, c, h, w)
    xn = xn * gamma[0][None, :, None, None] + beta[0][None, :, None, None]
    t = xn.reshape(n, c, h * w).transpose(0, 2, 1)                  # (N, HW, C)
    q = t @ wq + bq
    k = t @ wk + bk
    v = t @ wv + bv
    s = jnp.einsum('nqc,nkc->nqk', q, k) / jnp.sqrt(jnp.float32(c))
    p = jax.nn.softmax(s, axis=-1)
    o = jnp.einsum('nqk,nkc->nqc', p, v)
    o = o @ wo + bo
    o = o.transpose(0, 2, 1).reshape(n, c, h, w)
    return o + x


if __name__ == "__main__":
    key = jax.random.PRNGKey(0)
    n, c, h, w = 2, 64, 16, 16   # HW=256, C_pad=128

    ks = jax.random.split(key, 12)
    x = jax.random.normal(ks[0], (n, c, h, w), jnp.float32)

    init = 1.0 / jnp.sqrt(jnp.float32(c))
    gamma = 1.0 + 0.1 * jax.random.normal(ks[1], (1, c), jnp.float32)
    beta = 0.1 * jax.random.normal(ks[2], (1, c), jnp.float32)
    wq = init * jax.random.normal(ks[3], (c, c), jnp.float32)
    bq = 0.05 * jax.random.normal(ks[4], (1, c), jnp.float32)
    wk = init * jax.random.normal(ks[5], (c, c), jnp.float32)
    bk = 0.05 * jax.random.normal(ks[6], (1, c), jnp.float32)
    wv = init * jax.random.normal(ks[7], (c, c), jnp.float32)
    bv = 0.05 * jax.random.normal(ks[8], (1, c), jnp.float32)
    wo = init * jax.random.normal(ks[9], (c, c), jnp.float32)
    bo = 0.05 * jax.random.normal(ks[10], (1, c), jnp.float32)
    params = (gamma, beta, wq, bq, wk, bk, wv, bv, wo, bo)

    y = attention_block(x, params)
    jax.block_until_ready(y)

    y_ref = ref_forward(x, params)
    assert y.shape == x.shape and y.dtype == x.dtype
    # bf16 MXU inputs + approx reciprocal vs f32 reference -> loosened tolerance
    max_err = float(jnp.max(jnp.abs(y - y_ref)))
    assert max_err < 5e-2, f"max abs err {max_err}"
    print("KERNEL_OK")
</pallas_src>

<mosaic_0001>
module attributes {stable_mosaic.version = 11 : i64} {
  func.func @_norm_qkv_kernel(%arg0: i32, %arg1: i32, %arg2: memref<1x256x128xf32, #tpu.memory_space<vmem>>, %arg3: memref<1x1x128xf32, #tpu.memory_space<vmem>>, %arg4: memref<1x1x128xf32, #tpu.memory_space<vmem>>, %arg5: memref<128x128xbf16, #tpu.memory_space<vmem>>, %arg6: memref<128x128xbf16, #tpu.memory_space<vmem>>, %arg7: memref<128x128xbf16, #tpu.memory_space<vmem>>, %arg8: memref<1x128xf32, #tpu.memory_space<vmem>>, %arg9: memref<1x128xf32, #tpu.memory_space<vmem>>, %arg10: memref<1x128xf32, #tpu.memory_space<vmem>>, %arg11: memref<1x256x128xbf16, #tpu.memory_space<vmem>>, %arg12: memref<1x256x128xbf16, #tpu.memory_space<vmem>>, %arg13: memref<1x256x128xbf16, #tpu.memory_space<vmem>>) attributes {dimension_semantics = [#tpu.dimension_semantics<parallel>, #tpu.dimension_semantics<parallel>], iteration_bounds = array<i64: 2, 1>, scalar_prefetch = 0 : i64, scratch_operands = 0 : i64, tpu.core_type = #tpu.core_type<tc>, window_params = [{transform_indices = @transform_0, window_bounds = array<i64: 1, 256, 128>}, {transform_indices = @transform_1, window_bounds = array<i64: 1, 1, 128>}, {transform_indices = @transform_2, window_bounds = array<i64: 1, 1, 128>}, {pipeline_mode = #tpu.pipeline_mode<synchronous>, transform_indices = @transform_3, window_bounds = array<i64: 128, 128>}, {pipeline_mode = #tpu.pipeline_mode<synchronous>, transform_indices = @transform_4, window_bounds = array<i64: 128, 128>}, {pipeline_mode = #tpu.pipeline_mode<synchronous>, transform_indices = @transform_5, window_bounds = array<i64: 128, 128>}, {pipeline_mode = #tpu.pipeline_mode<synchronous>, transform_indices = @transform_6, window_bounds = array<i64: 1, 128>}, {pipeline_mode = #tpu.pipeline_mode<synchronous>, transform_indices = @transform_7, window_bounds = array<i64: 1, 128>}, {pipeline_mode = #tpu.pipeline_mode<synchronous>, transform_indices = @transform_8, window_bounds = array<i64: 1, 128>}, {transform_indices = @transform_9, window_bounds = array<i64: 1, 256, 128>}, {transform_indices = @transform_10, window_bounds = array<i64: 1, 256, 128>}, {transform_indices = @transform_11, window_bounds = array<i64: 1, 256, 128>}]} {
    %c0 = arith.constant 0 : index
    %c0_0 = arith.constant 0 : index
    %c0_1 = arith.constant 0 : index
    %0 = vector.load %arg2[%c0, %c0_0, %c0_1] : memref<1x256x128xf32, #tpu.memory_space<vmem>>, vector<1x256x128xf32>
    %1 = vector.shape_cast %0 : vector<1x256x128xf32> to vector<256x128xf32>
    %c0_2 = arith.constant 0 : index
    %c0_3 = arith.constant 0 : index
    %c0_4 = arith.constant 0 : index
    %2 = vector.load %arg3[%c0_2, %c0_3, %c0_4] : memref<1x1x128xf32, #tpu.memory_space<vmem>>, vector<1x1x128xf32>
    %3 = vector.shape_cast %2 : vector<1x1x128xf32> to vector<1x128xf32>
    %4 = vector.broadcast %3 : vector<1x128xf32> to vector<256x128xf32>
    %5 = arith.mulf %1, %4 : vector<256x128xf32>
    %c0_5 = arith.constant 0 : index
    %c0_6 = arith.constant 0 : index
    %c0_7 = arith.constant 0 : index
    %6 = vector.load %arg4[%c0_5, %c0_6, %c0_7] : memref<1x1x128xf32, #tpu.memory_space<vmem>>, vector<1x1x128xf32>
    %7 = vector.shape_cast %6 : vector<1x1x128xf32> to vector<1x128xf32>
    %8 = vector.broadcast %7 : vector<1x128xf32> to vector<256x128xf32>
    %9 = arith.addf %5, %8 : vector<256x128xf32>
    %10 = arith.truncf %9 : vector<256x128xf32> to vector<256x128xbf16>
    %c0_8 = arith.constant 0 : index
    %c0_9 = arith.constant 0 : index
    %11 = vector.load %arg5[%c0_8, %c0_9] : memref<128x128xbf16, #tpu.memory_space<vmem>>, vector<128x128xbf16>
    %cst = arith.constant dense<0.000000e+00> : vector<256x128xf32>
    %12 = tpu.matmul %10, %11, %cst {dimension_numbers = #tpu.dot_dimension_numbers<[1], [0], [0], [1], [0, 0, 1, 1], [], []>} : vector<256x128xbf16>, vector<128x128xbf16>, vector<256x128xf32> -> vector<256x128xf32>
    %c0_10 = arith.constant 0 : index
    %c0_11 = arith.constant 0 : index
    %13 = vector.load %arg8[%c0_10, %c0_11] : memref<1x128xf32, #tpu.memory_space<vmem>>, vector<1x128xf32>
    %14 = vector.broadcast %13 : vector<1x128xf32> to vector<256x128xf32>
    %15 = arith.addf %12, %14 : vector<256x128xf32>
    %16 = arith.truncf %15 : vector<256x128xf32> to vector<256x128xbf16>
    %c0_12 = arith.constant 0 : index
    %c0_13 = arith.constant 0 : index
    %c0_14 = arith.constant 0 : index
    %17 = vector.load %arg11[%c0_12, %c0_13, %c0_14] : memref<1x256x128xbf16, #tpu.memory_space<vmem>>, vector<1x256x128xbf16>
    %18 = vector.shape_cast %17 : vector<1x256x128xbf16> to vector<256x128xbf16>
    %19 = vector.shape_cast %16 : vector<256x128xbf16> to vector<1x256x128xbf16>
    tpu.vector_store %arg11[%c0_12, %c0_13, %c0_14], %19 {strides = array<i32>} : memref<1x256x128xbf16, #tpu.memory_space<vmem>>, vector<1x256x128xbf16>,
    %c0_15 = arith.constant 0 : index
    %c0_16 = arith.constant 0 : index
    %20 = vector.load %arg6[%c0_15, %c0_16] : memref<128x128xbf16, #tpu.memory_space<vmem>>, vector<128x128xbf16>
    %cst_17 = arith.constant dense<0.000000e+00> : vector<256x128xf32>
    %21 = tpu.matmul %10, %20, %cst_17 {dimension_numbers = #tpu.dot_dimension_numbers<[1], [0], [0], [1], [0, 0, 1, 1], [], []>} : vector<256x128xbf16>, vector<128x128xbf16>, vector<256x128xf32> -> vector<256x128xf32>
    %c0_18 = arith.constant 0 : index
    %c0_19 = arith.constant 0 : index
    %22 = vector.load %arg9[%c0_18, %c0_19] : memref<1x128xf32, #tpu.memory_space<vmem>>, vector<1x128xf32>
    %23 = vector.broadcast %22 : vector<1x128xf32> to vector<256x128xf32>
    %24 = arith.addf %21, %23 : vector<256x128xf32>
    %25 = arith.truncf %24 : vector<256x128xf32> to vector<256x128xbf16>
    %c0_20 = arith.constant 0 : index
    %c0_21 = arith.constant 0 : index
    %c0_22 = arith.constant 0 : index
    %26 = vector.load %arg12[%c0_20, %c0_21, %c0_22] : memref<1x256x128xbf16, #tpu.memory_space<vmem>>, vector<1x256x128xbf16>
    %27 = vector.shape_cast %26 : vector<1x256x128xbf16> to vector<256x128xbf16>
    %28 = vector.shape_cast %25 : vector<256x128xbf16> to vector<1x256x128xbf16>
    tpu.vector_store %arg12[%c0_20, %c0_21, %c0_22], %28 {strides = array<i32>} : memref<1x256x128xbf16, #tpu.memory_space<vmem>>, vector<1x256x128xbf16>,
    %c0_23 = arith.constant 0 : index
    %c0_24 = arith.constant 0 : index
    %29 = vector.load %arg7[%c0_23, %c0_24] : memref<128x128xbf16, #tpu.memory_space<vmem>>, vector<128x128xbf16>
    %cst_25 = arith.constant dense<0.000000e+00> : vector<256x128xf32>
    %30 = tpu.matmul %10, %29, %cst_25 {dimension_numbers = #tpu.dot_dimension_numbers<[1], [0], [0], [1], [0, 0, 1, 1], [], []>} : vector<256x128xbf16>, vector<128x128xbf16>, vector<256x128xf32> -> vector<256x128xf32>
    %c0_26 = arith.constant 0 : index
    %c0_27 = arith.constant 0 : index
    %31 = vector.load %arg10[%c0_26, %c0_27] : memref<1x128xf32, #tpu.memory_space<vmem>>, vector<1x128xf32>
    %32 = vector.broadcast %31 : vector<1x128xf32> to vector<256x128xf32>
    %33 = arith.addf %30, %32 : vector<256x128xf32>
    %34 = arith.truncf %33 : vector<256x128xf32> to vector<256x128xbf16>
    %c0_28 = arith.constant 0 : index
    %c0_29 = arith.constant 0 : index
    %c0_30 = arith.constant 0 : index
    %35 = vector.load %arg13[%c0_28, %c0_29, %c0_30] : memref<1x256x128xbf16, #tpu.memory_space<vmem>>, vector<1x256x128xbf16>
    %36 = vector.shape_cast %35 : vector<1x256x128xbf16> to vector<256x128xbf16>
    %37 = vector.shape_cast %34 : vector<256x128xbf16> to vector<1x256x128xbf16>
    tpu.vector_store %arg13[%c0_28, %c0_29, %c0_30], %37 {strides = array<i32>} : memref<1x256x128xbf16, #tpu.memory_space<vmem>>, vector<1x256x128xbf16>,
    return
  }
  func.func @transform_0(%arg0: i32, %arg1: i32) -> (i32, i32, i32) {
    %c0_i32 = arith.constant 0 : i32
    %c0_i32_0 = arith.constant 0 : i32
    return %arg0, %arg1, %c0_i32 : i32, i32, i32
  }
  func.func @transform_1(%arg0: i32, %arg1: i32) -> (i32, i32, i32) {
    %c0_i32 = arith.constant 0 : i32
    %c0_i32_0 = arith.constant 0 : i32
    %c0_i32_1 = arith.constant 0 : i32
    return %arg0, %c0_i32, %c0_i32_0 : i32, i32, i32
  }
  func.func @transform_2(%arg0: i32, %arg1: i32) -> (i32, i32, i32) {
    %c0_i32 = arith.constant 0 : i32
    %c0_i32_0 = arith.constant 0 : i32
    %c0_i32_1 = arith.constant 0 : i32
    return %arg0, %c0_i32, %c0_i32_0 : i32, i32, i32
  }
  func.func @transform_3(%arg0: i32, %arg1: i32) -> (i32, i32) {
    %c0_i32 = arith.constant 0 : i32
    %c0_i32_0 = arith.constant 0 : i32
    %c0_i32_1 = arith.constant 0 : i32
    return %c0_i32, %c0_i32_0 : i32, i32
  }
  func.func @transform_4(%arg0: i32, %arg1: i32) -> (i32, i32) {
    %c0_i32 = arith.constant 0 : i32
    %c0_i32_0 = arith.constant 0 : i32
    %c0_i32_1 = arith.constant 0 : i32
    return %c0_i32, %c0_i32_0 : i32, i32
  }
  func.func @transform_5(%arg0: i32, %arg1: i32) -> (i32, i32) {
    %c0_i32 = arith.constant 0 : i32
    %c0_i32_0 = arith.constant 0 : i32
    %c0_i32_1 = arith.constant 0 : i32
    return %c0_i32, %c0_i32_0 : i32, i32
  }
  func.func @transform_6(%arg0: i32, %arg1: i32) -> (i32, i32) {
    %c0_i32 = arith.constant 0 : i32
    %c0_i32_0 = arith.constant 0 : i32
    %c0_i32_1 = arith.constant 0 : i32
    return %c0_i32, %c0_i32_0 : i32, i32
  }
  func.func @transform_7(%arg0: i32, %arg1: i32) -> (i32, i32) {
    %c0_i32 = arith.constant 0 : i32
    %c0_i32_0 = arith.constant 0 : i32
    %c0_i32_1 = arith.constant 0 : i32
    return %c0_i32, %c0_i32_0 : i32, i32
  }
  func.func @transform_8(%arg0: i32, %arg1: i32) -> (i32, i32) {
    %c0_i32 = arith.constant 0 : i32
    %c0_i32_0 = arith.constant 0 : i32
    %c0_i32_1 = arith.constant 0 : i32
    return %c0_i32, %c0_i32_0 : i32, i32
  }
  func.func @transform_9(%arg0: i32, %arg1: i32) -> (i32, i32, i32) {
    %c0_i32 = arith.constant 0 : i32
    %c0_i32_0 = arith.constant 0 : i32
    return %arg0, %arg1, %c0_i32 : i32, i32, i32
  }
  func.func @transform_10(%arg0: i32, %arg1: i32) -> (i32, i32, i32) {
    %c0_i32 = arith.constant 0 : i32
    %c0_i32_0 = arith.constant 0 : i32
    return %arg0, %arg1, %c0_i32 : i32, i32, i32
  }
  func.func @transform_11(%arg0: i32, %arg1: i32) -> (i32, i32, i32) {
    %c0_i32 = arith.constant 0 : i32
    %c0_i32_0 = arith.constant 0 : i32
    return %arg0, %arg1, %c0_i32 : i32, i32, i32
  }
}

</mosaic_0001>

<bundles_post_ra>
// kernel: tpu_custom_call.1
= control target key start
LH: loop header
LB: loop body
LE: loop exit
PB: predicated region body
PF: predicated region fallthrough
CT: control target
= control target key end

     0   :  { %s4481_s0 = inlined_call_operand.hbm [shape: f32[2,256,128], index: 0, kind: input, shape index: {}]   ;;  %s4482_s1 = inlined_call_operand.hbm [shape: f32[2,1,128], index: 1, kind: input, shape index: {}]   ;;  %s4483_s2 = inlined_call_operand.hbm [shape: f32[2,1,128], index: 2, kind: input, shape index: {}]   ;;  %s4484_s3 = inlined_call_operand.hbm [shape: bf16[128,128], index: 3, kind: input, shape index: {}]   ;;  %s4485_s4 = inlined_call_operand.hbm [shape: bf16[128,128], index: 4, kind: input, shape index: {}]   ;;  %s4486_s5 = inlined_call_operand.hbm [shape: bf16[128,128], index: 5, kind: input, shape index: {}]   ;;  %s4487_s6 = inlined_call_operand.hbm [shape: f32[1,128], index: 6, kind: input, shape index: {}]   ;;  %s4488_s7 = inlined_call_operand.hbm [shape: f32[1,128], index: 7, kind: input, shape index: {}]   ;;  %s4489_s8 = inlined_call_operand.hbm [shape: f32[1,128], index: 8, kind: input, shape index: {}]   ;;  %s4490_s9 = inlined_call_operand.hbm [shape: bf16[2,256,128], index: 9, kind: output, shape index: {0}]   ;;  %s4491_s10 = inlined_call_operand.hbm [shape: bf16[2,256,128], index: 10, kind: output, shape index: {1}]   ;;  %s4492_s11 = inlined_call_operand.hbm [shape: bf16[2,256,128], index: 11, kind: output, shape index: {2}]  }
   0x1   :  { %4517 = sst [smem:[#allocation34_spill]] %s4482_s1 }
   0x2   :  { %4518 = sst [smem:[#allocation35_spill]] %s4484_s3 }
   0x3   :  { %4519 = sst [smem:[#allocation36_spill]] %s4486_s5 }
   0x4   :  { %4520 = sst [smem:[#allocation37_spill]] %s4488_s7 }
   0x5   :  { %4521 = sst [smem:[#allocation38_spill]] %s4490_s9 }
   0x6   :  { %4522 = sst [smem:[#allocation39_spill]] %s4491_s10 }
   0x7   :  { %4523 = sst [smem:[#allocation40_spill]] %s4492_s11 }
   0x8   :  { %17 = vsyncpa [#allocation3], 0 }
   0x9   :  { %19 = vsyncpa [#allocation3 + $0x1], 0 }
   0xa   :  { %20 = vsyncpa [#allocation6], 0 }
   0xb   :  { %22 = vsyncpa [#allocation6 + $0x1], 0 }
   0xc   :  { %23 = vsyncpa [#allocation9], 0 }
   0xd   :  { %24 = vsyncpa [#allocation12], 0 }
   0xe   :  { %25 = vsyncpa [#allocation15], 0 }
   0xf   :  { %26 = vsyncpa [#allocation4], 0 }
  0x10   :  { %28 = vsyncpa [#allocation4 + $0x1], 0 }
  0x11   :  { %29 = vsyncpa [#allocation19], 0 }
  0x12   :  { %31 = vsyncpa [#allocation19 + $0x1], 0  ;;  %s3656_s17 = smov 0   ;;  %s3658_s18 = smov 0  }
  0x13   :  { %s3660_s19 = smov 0   ;;  %s3662_s20 = smov 0  }
  0x14   :  { %s3664_s21 = smov 0   ;;  %s3666_s22 = smov 0  }
  0x15 LB: > { %4524 = sst [smem:[#allocation28_spill]] %s3564_s19  ;;  %s3687_s23 = sadd.s32 4294967295, %s3576_s22   ;;  %s3576_s22 = sphi %s3666_s22, %s37_s22   ;;  %s3572_s21 = sphi %s3664_s21, %s4575_s21   ;;  %s3568_s20 = sphi %s3662_s20, %s4574_s20   ;;  %s3564_s19 = sphi %s3660_s19, %s4570_s19   ;;  %s3560_s18 = sphi %s3658_s18, %s4573_s18   ;;  %s3556_s17 = sphi %s3656_s17, %s4572_s17  }
  0x16   : > { %4525 = sst [smem:[#allocation29_spill]] %s3568_s20  ;;  %p2210_p0 = scmp.ge.s32.totalorder %s3576_s22, 1 }
  0x17   : > { %4526 = sst [smem:[#allocation30_spill]] %s3576_s22  ;;  %p4497_p1 = scmp.eq.s32.totalorder %s3687_s23, 0 }
  0x18   : > { %p344_p2 = scmp.lt.s32.totalorder %s3576_s22, 3  ;;  %s3578_s25 = smov [#allocation8]  }
  0x19   : > { %s356_s26 = sshll.u32 %s3578_s25, 4  ;;  %s3579_s28 = smov [#allocation11]   ;;  %s3696_s26 = int_to_ptr.vmem [resolvable:$true] %s356_s26 }
  0x1a   : > { %p3692_p3 = pnand %p2210_p0, %p344_p2  ;;  %s382_s29 = sshll.u32 %s3579_s28, 4  ;;  %s3707_s29 = int_to_ptr.vmem [resolvable:$true] %s382_s29 }
  0x1b   : > { %s3580_s30 = smov [#allocation14]   ;;  %s4530_s3 = sld [smem:[#allocation35_spill]] }
  0x1c   : > { %s4527_s24 = scalar_select %p3692_p3, 1, 0 }
  0x1d   : > { %p3023_p4 = pneg %p3692_p3  ;;  %s3709_s12 = sshll.u32 %s3580_s30, 4  ;;  %s408_s12 = int_to_ptr.vmem [resolvable:$true] %s3709_s12 }
  0x1e   : > { %4528 = sst [smem:[#allocation31_spill]] %s4527_s24 }
  0x1f   : > { %p3703_p6 = pnand %p3023_p4, %p4497_p1 }
  0x21   : > { %s4529_s27 = scalar_select %p3703_p6, 1, 0 }
  0x22   : > { %s3160_s15 = scalar_lea.hbm %s4530_s3, 1024  ;;  %p3719_p8 = pneg %p3703_p6 }
  0x23   : > { %p3161_p7 = scmp.ne.s32.totalorder %s4530_s3, %s3160_s15  ;;  %p3167_p11 = scmp.lt.u32.totalorder %s3160_s15, %s4530_s3 }
  0x24   : > { %s4531_s11 = scalar_select %p3719_p8, 1, 0 }
  0x25   : > { %p3163_p9 = pnand %p3719_p8, %p3161_p7 }
  0x27   : > { %p3164_p10 = pneg %p3163_p9 }
  0x29   : > { %p3169_p12 = pnand %p3167_p11, %p3164_p10 }
  0x2b   : > { %3172 = shalt.err (!%p3169_p12)
}
  0x2c   : > { %s3173_s13 = scalar_lea.vmem %s3696_s26, 1024  ;;  %p3181_p4 = scmp.lt.s32.totalorder %s3696_s26, %s3696_s26 }
  0x2d   : > { %p3174_p13 = scmp.ne.s32.totalorder %s3696_s26, %s3173_s13  ;;  %p3182_p5 = scmp.lt.s32.totalorder %s3173_s13, %s3173_s13 }
  0x2f   : > { %p3176_p0 = pnand %p3174_p13, %p3719_p8  ;;  %p3183_p7 = por %p3182_p5, %p3181_p4 }
  0x31   : > { %p3177_p2 = pneg %p3176_p0 }
  0x33   : > { %p3184_p9 = pnand %p3183_p7, %p3177_p2 }
  0x35   : > { %3187 = shalt.err (!%p3184_p9)
}
  0x36   : > { %s4500_s14 = smov 64   ;;  %s4501_s15 = smov 4  }
  0x37   : > { %3026 = dma.hbm_to_vmem [thread:$0]  (!%p3703_p6), %s4530_s3, 1024, %s3696_s26, [#allocation9], %s4500_s14, %s4500_s14, %s4501_s15  }
  0x38   : > { %s4532_s5 = sld [smem:[#allocation36_spill]] }
  0x3e   : > { %s3188_s13 = scalar_lea.hbm %s4532_s5, 1024 }
  0x3f   : > { %p3189_p5 = scmp.ne.s32.totalorder %s4532_s5, %s3188_s13  ;;  %p3195_p12 = scmp.lt.u32.totalorder %s3188_s13, %s4532_s5 }
  0x41   : > { %p3191_p10 = pnand %p3189_p5, %p3719_p8 }
  0x43   : > { %p3192_p11 = pneg %p3191_p10 }
  0x45   : > { %p3197_p13 = pnand %p3195_p12, %p3192_p11 }
  0x47   : > { %3200 = shalt.err (!%p3197_p13)
}
  0x48   : > { %s3201_s26 = scalar_lea.vmem %s3707_s29, 1024  ;;  %p3209_p7 = scmp.lt.s32.totalorder %s3707_s29, %s3707_s29 }
  0x49   : > { %p3202_p0 = scmp.ne.s32.totalorder %s3707_s29, %s3201_s26  ;;  %p3210_p9 = scmp.lt.s32.totalorder %s3201_s26, %s3201_s26 }
  0x4b   : > { %p3204_p2 = pnand %p3202_p0, %p3719_p8  ;;  %p3211_p5 = por %p3210_p9, %p3209_p7 }
  0x4d   : > { %p3205_p4 = pneg %p3204_p2 }
  0x4f   : > { %p3212_p10 = pnand %p3211_p5, %p3205_p4 }
  0x51   : > { %3215 = shalt.err (!%p3212_p10)
}
  0x52   : > { %3032 = dma.hbm_to_vmem [thread:$0]  (!%p3703_p6), %s4532_s5, 1024, %s3707_s29, [#allocation12], %s4500_s14, %s4500_s14, %s4501_s15  }
  0x53   : > { %s4533_s7 = sld [smem:[#allocation37_spill]] }
  0x59   : > { %s3216_s16 = scalar_lea.hbm %s4533_s7, 16 }
  0x5a   : > { %p3217_p11 = scmp.ne.s32.totalorder %s4533_s7, %s3216_s16  ;;  %p3223_p0 = scmp.lt.u32.totalorder %s3216_s16, %s4533_s7 }
  0x5c   : > { %p3219_p12 = pnand %p3217_p11, %p3719_p8 }
  0x5e   : > { %p3220_p13 = pneg %p3219_p12 }
  0x60   : > { %p3225_p2 = pnand %p3223_p0, %p3220_p13 }
  0x62   : > { %3228 = shalt.err (!%p3225_p2)
}
  0x63   : > { %s3229_s26 = scalar_lea.vmem %s408_s12, 16  ;;  %s3236_s29 = scalar_lea.vmem %s408_s12, 32 }
  0x64   : > { %p3230_p4 = scmp.ne.s32.totalorder %s408_s12, %s3229_s26  ;;  %p3237_p5 = scmp.lt.s32.totalorder %s408_s12, %s408_s12 }
  0x65   : > { %p3238_p10 = scmp.lt.s32.totalorder %s3236_s29, %s3229_s26 }
  0x66   : > { %p3232_p7 = pnand %p3230_p4, %p3719_p8 }
  0x67   : > { %p3239_p1 = por %p3238_p10, %p3237_p5 }
  0x68   : > { %p3233_p9 = pneg %p3232_p7 }
  0x6a   : > { %p3240_p3 = pnand %p3239_p1, %p3233_p9 }
  0x6c   : > { %3243 = shalt.err (!%p3240_p3)
}
  0x6d   : > { %3038 = dma.hbm_to_vmem [thread:$0]  (!%p3703_p6), %s4533_s7, 16, %s408_s12, [#allocation15]  }
  0x6e   : > { %s4499_s20 = sadd.s32 4294967294, %s3576_s22   ;;  %s49_s24 = sadd.s32 1, %s3572_s21 }
  0x6f   : > { %s58_s16 = sadd.s32 1, %s3564_s19  ;;  %p51_p1 = scmp.ge.s32.totalorder %s49_s24, 2 }
  0x70   : > { %p65_p3 = scmp.ne.s32.totalorder %s3564_s19, %s3560_s18  ;;  %p66_p11 = scmp.eq.s32.totalorder %s3576_s22, 0 }
  0x71   : > { %p71_p12 = scmp.ne.s32.totalorder %s3560_s18, %s3556_s17  ;;  %s4577_s24 = smov (%p51_p1, %s49_s24), 0 }
  0x72   : > { %4534 = sst [smem:[#allocation32_spill]] %s4577_s24  ;;  %p67_p13 = por %p66_p11, %p65_p3 }
  0x73   : > { %p4535_p0 = scmp.eq.s32.totalorder %s3687_s23, 0  ;;  %s53_s25 = ssub.s32 %s3572_s21, %s4577_s24 }
  0x74   : > { %p275_p4 = scmp.eq.s32.totalorder %s3687_s23, 1  ;;  %p56_p7 = scmp.eq.s32.totalorder %s53_s25, 0 }
  0x75   : > { %p3800_p2 = por %p4535_p0, %p71_p12  ;;  %p281_p9 = scmp.eq.s32.totalorder %s4499_s20, 1 }
  0x76   : > { %p3809_p5 = por %p275_p4, %p65_p3  ;;  %p3068_p10 = scmp.lt.s32.totalorder %s3576_s22, 2 }
  0x77   : > { %s4536_s12 = scalar_select %p3800_p2, 1, 0 }
  0x78   : > { %s4537_s28 = scalar_select %p3809_p5, 1, 0 }
  0x79   : > { %s3815_s30 = scalar_select %p56_p7, %s3564_s19, %s58_s16  }
  0x7a   : > { %p3817_p1 = por %p281_p9, %p71_p12  ;;  %s3822_s26 = sand.u32 1, %s3564_s19  }
  0x7b   : > { %4538 = sst [smem:[#allocation33_spill]] %s3815_s30  ;;  %p3824_p11 = pnand %p3068_p10, %p67_p13 }
  0x7c   : > { %s4539_s13 = scalar_select %p3817_p1, 1, 0 }
  0x7d   : > { %s4540_s29 = scalar_select %p3824_p11, 1, 0 }
  0x7e   : > { %s452_s9 = sand.u32 1, %s3576_s22   ;;  %s4502_s10 = sshll.u32 %s3572_s21, 4 }
  0x7f   : > { %s4541_s1 = sld [smem:[#allocation34_spill]]  ;;  %s455_s14 = scalar_lea.vmem [#allocation5], %s3822_s26 }
  0x80   : > { %s462_s15 = sshll.u32 %s455_s14, 4  ;;  %s3840_s3 = scalar_lea.sflag [#allocation6], %s452_s9  ;;  %s3838_s15 = int_to_ptr.vmem [resolvable:$true] %s462_s15 }
  0x81   : > { %p3846_p12 = pneg %p3824_p11 }
  0x83   : > { %s4542_s7 = scalar_select %p3846_p12, 1, 0 }
  0x85   : > { %s3835_s16 = scalar_lea.hbm %s4541_s1, %s4502_s10  ;;  %s3249_s10 = scalar_lea.hbm %s4541_s1, 32 }
  0x86   : > { %s3244_s5 = scalar_lea.hbm %s3835_s16, 16  ;;  %p3250_p4 = scmp.lt.u32.totalorder %s3835_s16, %s4541_s1 }
  0x87   : > { %p3245_p3 = scmp.ne.s32.totalorder %s3835_s16, %s3244_s5  ;;  %p3251_p7 = scmp.lt.u32.totalorder %s3249_s10, %s3244_s5 }
  0x88   : > { %p3253_p10 = scmp.lt.u32.totalorder %s3244_s5, %s3835_s16 }
  0x89   : > { %p3247_p13 = pnand %p3846_p12, %p3245_p3  ;;  %p3252_p9 = por %p3251_p7, %p3250_p4 }
  0x8b   : > { %p3248_p0 = pneg %p3247_p13  ;;  %p3254_p1 = por %p3253_p10, %p3252_p9 }
  0x8d   : > { %p3255_p5 = pnand %p3254_p1, %p3248_p0 }
  0x8f   : > { %3258 = shalt.err (!%p3255_p5)
}
  0x90   : > { %s3259_s9 = scalar_lea.vmem %s3838_s15, 16  ;;  %s3583_s20 = smov [#allocation5]  }
  0x91   : > { %p3260_p3 = scmp.ne.s32.totalorder %s3838_s15, %s3259_s9  ;;  %s3264_s25 = sshll.u32 %s3583_s20, 4  ;;  %s3265_s25 = int_to_ptr.vmem [resolvable:$false] %s3264_s25 }
  0x92   : > { %s3266_s24 = scalar_lea.vmem %s3265_s25, 32  ;;  %p3267_p6 = scmp.lt.s32.totalorder %s3838_s15, %s3265_s25 }
  0x93   : > { %p3262_p13 = pnand %p3260_p3, %p3846_p12  ;;  %p3268_p8 = scmp.lt.s32.totalorder %s3266_s24, %s3259_s9 }
  0x95   : > { %p3263_p2 = pneg %p3262_p13  ;;  %p3269_p4 = por %p3268_p8, %p3267_p6 }
  0x97   : > { %p3270_p7 = pnand %p3269_p4, %p3263_p2 }
  0x99   : > { %3273 = shalt.err (!%p3270_p7)
}
  0x9a   : > { %3048 = dma.hbm_to_vmem [thread:$0]  (!%p3824_p11), %s3835_s16, 16, %s3838_s15, %s3840_s3  }
  0x9b   : > { %s3584_s5 = smov [#allocation10]   ;;  %s3585_s14 = smov [#allocation13]  }
  0x9c   : > { %s369_s10 = sshll.u32 %s3584_s5, 4  ;;  %s396_s1 = sshll.u32 %s3585_s14, 4  ;;  %s370_s10 = int_to_ptr.vmem [resolvable:$true] %s369_s10  ;;  %s3870_s1 = int_to_ptr.vmem [resolvable:$true] %s396_s1 }
  0x9d   : > { %s3274_s9 = scalar_lea.hbm %s4485_s4, 1024  ;;  %p4543_p8 = scmp.ne.s32.totalorder %s4531_s11, 0 }
  0x9e   : > { %p3275_p6 = scmp.ne.s32.totalorder %s4485_s4, %s3274_s9  ;;  %p3281_p1 = scmp.lt.u32.totalorder %s3274_s9, %s4485_s4 }
  0xa0   : > { %p3277_p2 = pnand %p3275_p6, %p4543_p8 }
  0xa2   : > { %p3278_p5 = pneg %p3277_p2 }
  0xa4   : > { %p3283_p0 = pnand %p3281_p1, %p3278_p5 }
  0xa6   : > { %3286 = shalt.err (!%p3283_p0)
}
  0xa7   : > { %s3287_s16 = scalar_lea.vmem %s370_s10, 1024  ;;  %p3295_p13 = scmp.lt.s32.totalorder %s370_s10, %s370_s10 }
  0xa8   : > { %p3288_p9 = scmp.ne.s32.totalorder %s370_s10, %s3287_s16  ;;  %p3296_p4 = scmp.lt.s32.totalorder %s3287_s16, %s3287_s16 }
  0xaa   : > { %p3290_p10 = pnand %p3288_p9, %p4543_p8  ;;  %p3297_p7 = por %p3296_p4, %p3295_p13 }
  0xac   : > { %p3291_p3 = pneg %p3290_p10 }
  0xae   : > { %p3298_p11 = pnand %p3297_p7, %p3291_p3 }
  0xb0   : > { %3301 = shalt.err (!%p3298_p11)
}
  0xb1   : > { %p4544_p6 = scmp.ne.s32.totalorder %s4529_s27, 0  ;;  %s4545_s30 = smov 4  }
  0xb2   : > { %s4546_s5 = smov 64   ;;  %s3302_s9 = scalar_lea.hbm %s4487_s6, 16 }
  0xb3   : > { %3029 = dma.hbm_to_vmem [thread:$0]  (!%p4544_p6), %s4485_s4, 1024, %s370_s10, [#allocation9], %s4546_s5, %s4546_s5, %s4545_s30  }
  0xb4   : > { %p3303_p2 = scmp.ne.s32.totalorder %s4487_s6, %s3302_s9  ;;  %p3309_p1 = scmp.lt.u32.totalorder %s3302_s9, %s4487_s6 }
  0xb6   : > { %p3305_p11 = pnand %p3303_p2, %p4543_p8 }
  0xb8   : > { %p3306_p5 = pneg %p3305_p11 }
  0xba   : > { %p3311_p0 = pnand %p3309_p1, %p3306_p5 }
  0xbc   : > { %3314 = shalt.err (!%p3311_p0)
}
  0xbd   : > { %s3315_s10 = scalar_lea.vmem %s3870_s1, 16  ;;  %s3322_s30 = scalar_lea.vmem %s3870_s1, 32 }
  0xbe   : > { %p3316_p9 = scmp.ne.s32.totalorder %s3870_s1, %s3315_s10  ;;  %p3323_p13 = scmp.lt.s32.totalorder %s3870_s1, %s3870_s1 }
  0xbf   : > { %p3324_p4 = scmp.lt.s32.totalorder %s3322_s30, %s3315_s10 }
  0xc0   : > { %p3318_p10 = pnand %p3316_p9, %p4543_p8 }
  0xc1   : > { %p3325_p7 = por %p3324_p4, %p3323_p13 }
  0xc2   : > { %p3319_p3 = pneg %p3318_p10 }
  0xc4   : > { %p3326_p2 = pnand %p3325_p7, %p3319_p3 }
  0xc6   : > { %3329 = shalt.err (!%p3326_p2)
}
  0xc7   : > { %3035 = dma.hbm_to_vmem [thread:$0]  (!%p4544_p6), %s4487_s6, 16, %s3870_s1, [#allocation12]  }
  0xc8   : > { %s3586_s19 = smov [#allocation16]   ;;  %s2218_s20 = sshll.u32 %s3822_s26, 8 }
  0xc9   : > { %s418_s14 = sshll.u32 %s3586_s19, 4  ;;  %s3330_s24 = scalar_lea.hbm %s4489_s8, 16  ;;  %s419_s14 = int_to_ptr.vmem [resolvable:$true] %s418_s14 }
  0xca   : > { %p3331_p11 = scmp.ne.s32.totalorder %s4489_s8, %s3330_s24  ;;  %p3337_p0 = scmp.lt.u32.totalorder %s3330_s24, %s4489_s8 }
  0xcc   : > { %p3333_p5 = pnand %p3331_p11, %p4543_p8 }
  0xce   : > { %p3334_p1 = pneg %p3333_p5 }
  0xd0   : > { %p3339_p9 = pnand %p3337_p0, %p3334_p1 }
  0xd2   : > { %3342 = shalt.err (!%p3339_p9)
}
  0xd3   : > { %s3343_s1 = scalar_lea.vmem %s419_s14, 16  ;;  %s3350_s22 = scalar_lea.vmem %s419_s14, 32 }
  0xd4   : > { %p3344_p10 = scmp.ne.s32.totalorder %s419_s14, %s3343_s1  ;;  %p3351_p4 = scmp.lt.s32.totalorder %s419_s14, %s419_s14 }
  0xd5   : > { %p3352_p7 = scmp.lt.s32.totalorder %s3350_s22, %s3343_s1 }
  0xd6   : > { %p3346_p3 = pnand %p3344_p10, %p4543_p8 }
  0xd7   : > { %p3353_p2 = por %p3352_p7, %p3351_p4 }
  0xd8   : > { %p3347_p13 = pneg %p3346_p3 }
  0xda   : > { %p3354_p12 = pnand %p3353_p2, %p3347_p13 }
  0xdc   : > { %3357 = shalt.err (!%p3354_p12)
}
  0xdd   : > { %3041 = dma.hbm_to_vmem [thread:$0]  (!%p4544_p6), %s4489_s8, 16, %s419_s14, [#allocation15]  }
  0xde   : > { %s2370_s25 = sshll.u32 %s3572_s21, 12  ;;  %s433_s9 = scalar_lea.vmem [#allocation2], %s2218_s20 }
  0xdf   : > { %s442_s11 = sshll.u32 %s433_s9, 4  ;;  %s3940_s16 = scalar_lea.hbm %s4481_s0, %s2370_s25  ;;  %s3942_s11 = int_to_ptr.vmem [resolvable:$true] %s442_s11 }
  0xe0   : > { %s430_s27 = scalar_lea.sflag [#allocation3], %s3822_s26  ;;  %s3358_s10 = scalar_lea.hbm %s3940_s16, 4096 }
  0xe1   : > { %p3359_p12 = scmp.ne.s32.totalorder %s3940_s16, %s3358_s10  ;;  %p4547_p8 = scmp.ne.s32.totalorder %s4542_s7, 0 }
  0xe2   : > { %s3363_s30 = scalar_lea.hbm %s4481_s0, 8192  ;;  %p3364_p5 = scmp.lt.u32.totalorder %s3940_s16, %s4481_s0 }
  0xe3   : > { %p3361_p11 = pnand %p3359_p12, %p4547_p8  ;;  %p3365_p1 = scmp.lt.u32.totalorder %s3363_s30, %s3358_s10 }
  0xe4   : > { %p3367_p9 = scmp.lt.u32.totalorder %s3358_s10, %s3940_s16 }
  0xe5   : > { %p3362_p6 = pneg %p3361_p11  ;;  %p3366_p0 = por %p3365_p1, %p3364_p5 }
  0xe7   : > { %p3368_p10 = por %p3367_p9, %p3366_p0 }
  0xe9   : > { %p3369_p3 = pnand %p3368_p10, %p3362_p6 }
  0xeb   : > { %3372 = shalt.err (!%p3369_p3)
}
  0xec   : > { %s3373_s5 = scalar_lea.vmem %s3942_s11, 4096  ;;  %s3587_s19 = smov [#allocation2]  }
  0xed   : > { %p3374_p13 = scmp.ne.s32.totalorder %s3942_s11, %s3373_s5  ;;  %s3378_s25 = sshll.u32 %s3587_s19, 4  ;;  %s3379_s25 = int_to_ptr.vmem [resolvable:$false] %s3378_s25 }
  0xee   : > { %s3380_s9 = scalar_lea.vmem %s3379_s25, 8192  ;;  %p3381_p2 = scmp.lt.s32.totalorder %s3942_s11, %s3379_s25 }
  0xef   : > { %p3376_p4 = pnand %p3374_p13, %p4547_p8  ;;  %p3382_p12 = scmp.lt.s32.totalorder %s3380_s9, %s3373_s5 }
  0xf1   : > { %p3377_p7 = pneg %p3376_p4  ;;  %p3383_p11 = por %p3382_p12, %p3381_p2 }
  0xf3   : > { %p3384_p5 = pnand %p3383_p11, %p3377_p7 }
  0xf5   : > { %3387 = shalt.err (!%p3384_p5)
}
  0xf6   : > { %s3588_s24 = smov 128   ;;  %s3589_s15 = smov 8  }
  0xf7   : > { %p4548_p6 = scmp.ne.s32.totalorder %s4540_s29, 0  ;;  %s4549_s10 = sshll.u32 %s3572_s21, 4 }
  0xf8   : > { %s3973_s30 = scalar_lea.hbm %s4483_s2, %s4549_s10  ;;  %s472_s1 = scalar_lea.vmem [#allocation7], %s3822_s26 }
  0xf9   : > { %3045 = dma.hbm_to_vmem [thread:$0]  (!%p4548_p6), %s3940_s16, 4096, %s3942_s11, %s430_s27, %s3588_s24, %s3588_s24, %s3589_s15  }
  0xfa   : > { %s479_s22 = sshll.u32 %s472_s1, 4  ;;  %s3388_s5 = scalar_lea.hbm %s3973_s30, 16  ;;  %s480_s22 = int_to_ptr.vmem [resolvable:$true] %s479_s22 }
  0xfb   : > { %p3389_p1 = scmp.ne.s32.totalorder %s3973_s30, %s3388_s5  ;;  %s3393_s16 = scalar_lea.hbm %s4483_s2, 32 }
  0xfc   : > { %p3394_p10 = scmp.lt.u32.totalorder %s3973_s30, %s4483_s2  ;;  %p3395_p3 = scmp.lt.u32.totalorder %s3393_s16, %s3388_s5 }
  0xfd   : > { %p3391_p0 = pnand %p3389_p1, %p4547_p8  ;;  %p3397_p4 = scmp.lt.u32.totalorder %s3388_s5, %s3973_s30 }
  0xfe   : > { %p3396_p13 = por %p3395_p3, %p3394_p10 }
  0xff   : > { %p3392_p9 = pneg %p3391_p0 }
 0x100   : > { %p3398_p7 = por %p3397_p4, %p3396_p13 }
 0x102   : > { %p3399_p2 = pnand %p3398_p7, %p3392_p9 }
 0x104   : > { %3402 = shalt.err (!%p3399_p2)
}
 0x105   : > { %s3403_s26 = scalar_lea.vmem %s480_s22, 16  ;;  %s3590_s9 = smov [#allocation7]  }
 0x106   : > { %p3404_p12 = scmp.ne.s32.totalorder %s480_s22, %s3403_s26  ;;  %s3408_s24 = sshll.u32 %s3590_s9, 4  ;;  %s3409_s24 = int_to_ptr.vmem [resolvable:$false] %s3408_s24 }
 0x107   : > { %s3410_s15 = scalar_lea.vmem %s3409_s24, 32  ;;  %p3411_p1 = scmp.lt.s32.totalorder %s480_s22, %s3409_s24 }
 0x108   : > { %p3406_p11 = pnand %p3404_p12, %p4547_p8  ;;  %p3412_p0 = scmp.lt.s32.totalorder %s3410_s15, %s3403_s26 }
 0x10a   : > { %p3407_p5 = pneg %p3406_p11  ;;  %p3413_p6 = por %p3412_p0, %p3411_p1 }
 0x10c   : > { %p3414_p3 = pnand %p3413_p6, %p3407_p5 }
 0x10e   : > { %3417 = shalt.err (!%p3414_p3)
}
 0x10f   : > { %p4550_p10 = scmp.ne.s32.totalorder %s4540_s29, 0  ;;  %s4551_s10 = sld [smem:[#allocation31_spill]] }
 0x111   : > { %3051 = dma.hbm_to_vmem [thread:$0]  (!%p4550_p10), %s3973_s30, 16, %s480_s22, %s3840_s3  }
 0x115   : > { %p4552_p9 = scmp.ne.s32.totalorder %s4551_s10, 0 }
 0x116   : > { %s3997_s7 = sand.u32 (!%p4552_p9), 1, %s3560_s18   ;;  %p4553_p8 = scmp.ne.s32.totalorder (!%p4552_p9), %s4536_s12, 0 }
 0x117   : > { %488 = sbr.rel (%p4552_p9) target bundleno = 675 (0x2a3), region = 56  ;;  %s2224_s14 = sshll.u32 (!%p4552_p9), %s3997_s7, 8 }
 0x118   : > { %s491_s20 = scalar_lea.sflag (!%p4552_p9), [#allocation3], %s3997_s7  ;;  %s4001_s1 = scalar_lea.vmem (!%p4552_p9), [#allocation2], %s2224_s14 }
 0x11e   : > { %3527 = dma.done.wait (%p4553_p8), %s491_s20, 4096  }
 0x11f   : > { %3529 = vsyncadd (%p4553_p8), %s491_s20, 4294963200  ;;  %s499_s3 = sand.u32 1, %s3687_s23   ;;  %s502_s30 = scalar_lea.vmem [#allocation5], %s3997_s7 }
 0x120   : > { %s500_s29 = scalar_lea.sflag [#allocation6], %s499_s3 }
 0x121   : > { %3531 = dma.done.wait (%p4553_p8), %s500_s29, 32  }
 0x122   : > { %3533 = vsyncadd (%p4553_p8), %s500_s29, 4294967264  ;;  %s510_s22 = scalar_lea.vmem [#allocation7], %s3997_s7  ;;  %p4554_p6 = scmp.eq.s32.totalorder %s3687_s23, 0 }
 0x124   : > { %3535 = dma.done.wait (%p4554_p6), [#allocation9], 2048   ;;  %p4555_p13 = pmov %p4554_p6 }
 0x125   : > { %p4556_p4 = pmov %p4554_p6 }
 0x126   : > { %3537 = vsyncadd (%p4555_p13), [#allocation9], 4294965248 }
 0x127   : > { %3539 = dma.done.wait (%p4556_p4), [#allocation12], 1040   ;;  %p4557_p7 = pmov %p4556_p4 }
 0x128   : > { %p4558_p2 = pmov %p4556_p4 }
 0x129   : > { %3541 = vsyncadd (%p4557_p7), [#allocation12], 4294966256 }
 0x12a   : > { %3543 = dma.done.wait (%p4558_p2), [#allocation15], 32   ;;  %p4559_p12 = pmov %p4558_p2 }
 0x12b   : > { %v3136_v0 = vld [vmem:[#allocation8] sm:$0xff]   ;;  %v3137_v1 = vld [vmem:[#allocation8 + $0x8] sm:$0xff]   ;;  %v3138_v2 = vld [vmem:[#allocation8 + $0x10] sm:$0xff]   ;;  %s4187_s12 = sshll.u32 %s3997_s7, 7  ;;  %s4560_s19 = sld [smem:[#allocation29_spill]] }
 0x12c   : > { %3545 = vsyncadd (%p4559_p12), [#allocation15], 4294967264  ;;  %2827 = vmatprep.subr.bf16.mxu0 %v3136_v0  ;;  %2971 = vmatprep.subr.bf16.mxu1 %v3136_v0  ;;  %v3139_v3 = vld [vmem:[#allocation8 + $0x18] sm:$0xff]   ;;  %v597_v5 = vld [vmem:[%s4001_s1 + $0x8] sm:$0xff]  ;;  %s4197_s5 = scalar_lea.vmem [#allocation17], %s4187_s12  ;;  %s4561_s26 = sld [smem:[#allocation38_spill]] }
 0x12d   : > { %2828 = vmatpush3.bf16.msra.mxu0 %v3136_v0  ;;  %2979 = vmatpush3.bf16.msra.mxu1 %v3136_v0  ;;  %v596_v4 = vld [vmem:[%s4001_s1] sm:$0xff]  ;;  %v613_v11 = vld [vmem:[%s4001_s1 + $0x88] sm:$0xff]  ;;  %v598_v22 = vld [vmem:[%s4001_s1 + $0x10] sm:$0xff]  ;;  %s1924_s16 = sshll.u32 %s4197_s5, 4  ;;  %s1899_s24 = scalar_lea.sflag [#allocation4], %s3997_s7  ;;  %s4247_s16 = int_to_ptr.vmem [resolvable:$true] %s1924_s16 }
 0x12e   : > { %2829 = vmatprep.subr.bf16.mxu0 %v3137_v1  ;;  %2972 = vmatprep.subr.bf16.mxu1 %v3137_v1  ;;  %v4030_v6 = vld [vmem:[%s502_s30] ss:$0 sm:$0xff]  ;;  %v3140_v16 = vld [vmem:[#allocation8 + $0x20] sm:$0xff]   ;;  %v3141_v21 = vld [vmem:[#allocation8 + $0x28] sm:$0xff]   ;;  %s3418_s15 = scalar_lea.vmem %s4247_s16, 2048  ;;  %p4562_p5 = scmp.ne.s32.totalorder %s4537_s28, 0 }
 0x12f   : > { %v635_v7 = vmul.f32 %v4030_v6, %v596_v4  ;;  %v636_v8 = vmul.f32 %v4030_v6, %v597_v5  ;;  %v4034_v9 = vld [vmem:[%s510_s22] ss:$0 sm:$0xff]  ;;  %v652_v13 = vmul.f32 %v4030_v6, %v613_v11  ;;  %v599_v23 = vld [vmem:[%s4001_s1 + $0x18] sm:$0xff]  ;;  %v614_v25 = vld [vmem:[%s4001_s1 + $0x90] sm:$0xff]  ;;  %v637_v28 = vmul.f32 %v4030_v6, %v598_v22  ;;  %p3419_p11 = scmp.ne.s32.totalorder %s4247_s16, %s3418_s15  ;;  %s3591_s10 = smov [#allocation17]  }
 0x130   : > { %v612_v10 = vld [vmem:[%s4001_s1 + $0x80] sm:$0xff]  ;;  %v3142_v24 = vld [vmem:[#allocation8 + $0x30] sm:$0xff]   ;;  %v638_v29 = vmul.f32 %v4030_v6, %v599_v23  ;;  %v601_v30 = vld [vmem:[%s4001_s1 + $0x28] sm:$0xff]  ;;  %v653_v31 = vmul.f32 %v4030_v6, %v614_v25  ;;  %s3422_s14 = sshll.u32 %s3591_s10, 4  ;;  %s3423_s14 = int_to_ptr.vmem [resolvable:$false] %s3422_s14 }
 0x131   : > { %2830 = vmatpush3.bf16.msra.mxu0 %v3137_v1  ;;  %2980 = vmatpush3.bf16.msra.mxu1 %v3137_v1  ;;  %v651_v12 = vmul.f32 %v4030_v6, %v612_v10  ;;  %v674_v14 = vadd.f32 %v4034_v9, %v635_v7  ;;  %v675_v15 = vadd.f32 %v4034_v9, %v636_v8  ;;  %v615_v26 = vld [vmem:[%s4001_s1 + $0x98] sm:$0xff]  ;;  %v600_v27 = vld [vmem:[%s4001_s1 + $0x20] sm:$0xff]  ;;  %v617_v34 = vld [vmem:[%s4001_s1 + $0xa8] sm:$0xff]  ;;  %s4232_s11 = sshll.u32 %s4560_s19, 11  ;;  %p3420_p1 = pnand %p3419_p11, %p4562_p5 }
 0x132   : > { %2831 = vmatprep.subr.bf16.mxu0 %v3138_v2  ;;  %2973 = vmatprep.subr.bf16.mxu1 %v3138_v2  ;;  %v691_v18 = vadd.f32 %v4034_v9, %v652_v13  ;;  %v654_v32 = vmul.f32 %v4030_v6, %v615_v26  ;;  %v616_v33 = vld [vmem:[%s4001_s1 + $0xa0] sm:$0xff]  ;;  %v639_v36 = vmul.f32 %v4030_v6, %v600_v27  ;;  %v602_v38 = vld [vmem:[%s4001_s1 + $0x30] sm:$0xff]  ;;  %v603_v43 = vld [vmem:[%s4001_s1 + $0x38] sm:$0xff]  ;;  %s4245_s9 = scalar_lea.hbm %s4561_s26, %s4232_s11  ;;  %s3424_s20 = scalar_lea.vmem %s3423_s14, 4096 }
 0x133   : > { %v690_v17 = vadd.f32 %v4034_v9, %v651_v12  ;;  %v4044_v19 = vpack.c.bf16 %v675_v15, %v674_v14  ;;  %v3143_v35 = vld [vmem:[#allocation8 + $0x38] sm:$0xff]   ;;  %v640_v37 = vmul.f32 %v4030_v6, %v601_v30  ;;  %v676_v39 = vadd.f32 %v4034_v9, %v637_v28  ;;  %v618_v46 = vld [vmem:[%s4001_s1 + $0xb0] sm:$0xff]  ;;  %v3144_v48 = vld [vmem:[#allocation10] sm:$0xff]   ;;  %p3421_p0 = pneg %p3420_p1  ;;  %p3425_p3 = scmp.lt.s32.totalorder %s4247_s16, %s3423_s14 }
 0x134   : > { %v677_v40 = vadd.f32 %v4034_v9, %v638_v29  ;;  %v655_v41 = vmul.f32 %v4030_v6, %v616_v33  ;;  %v656_v42 = vmul.f32 %v4030_v6, %v617_v34  ;;  %v692_v44 = vadd.f32 %v4034_v9, %v653_v31  ;;  %v619_v47 = vld [vmem:[%s4001_s1 + $0xb8] sm:$0xff]  ;;  %v3145_v49 = vld [vmem:[#allocation11] sm:$0xff]   ;;  %v3146_v59 = vld [vmem:[#allocation10 + $0x8] sm:$0xff]   ;;  %p3426_p10 = scmp.lt.s32.totalorder %s3424_s20, %s3418_s15 }
 0x135   : > { %2832 = vmatpush3.bf16.msra.mxu0 %v3138_v2  ;;  %2981 = vmatpush3.bf16.msra.mxu1 %v3138_v2  ;;  %v4046_v20 = vpack.c.bf16 %v691_v18, %v690_v17  ;;  %v693_v45 = vadd.f32 %v4034_v9, %v654_v32  ;;  %v678_v50 = vadd.f32 %v4034_v9, %v639_v36  ;;  %v604_v56 = vld [vmem:[%s4001_s1 + $0x40] sm:$0xff]  ;;  %v605_v57 = vld [vmem:[%s4001_s1 + $0x48] sm:$0xff]  ;;  %v606_v5 = vld [vmem:[%s4001_s1 + $0x50] sm:$0xff] }
 0x136   : > { %2833 = vmatprep.subr.bf16.mxu0 %v3139_v3  ;;  %2974 = vmatprep.subr.bf16.mxu1 %v3139_v3  ;;  %v679_v51 = vadd.f32 %v4034_v9, %v640_v37  ;;  %v4076_v52 = vpack.c.bf16 %v677_v40, %v676_v39  ;;  %v694_v53 = vadd.f32 %v4034_v9, %v655_v41  ;;  %v620_v63 = vld [vmem:[%s4001_s1 + $0xc0] sm:$0xff]  ;;  %v621_v0 = vld [vmem:[%s4001_s1 + $0xc8] sm:$0xff]  ;;  %v607_v12 = vld [vmem:[%s4001_s1 + $0x58] sm:$0xff]  ;;  %p3427_p9 = por %p3426_p10, %p3425_p3 }
 0x137   : > { %2843 = vmatprep.mubr.bf16.mxu0 %v4044_v19  ;;  %2859 = vmatprep.mubr.bf16.mxu1 %v4046_v20  ;;  %v695_v54 = vadd.f32 %v4034_v9, %v656_v42  ;;  %v641_v55 = vmul.f32 %v4030_v6, %v602_v38  ;;  %v4083_v58 = vpack.c.bf16 %v693_v45, %v692_v44  ;;  %v3147_v1 = vld [vmem:[#allocation11 + $0x8] sm:$0xff]   ;;  %v623_v18 = vld [vmem:[%s4001_s1 + $0xd8] sm:$0xff]  ;;  %v608_v28 = vld [vmem:[%s4001_s1 + $0x60] sm:$0xff] }
 0x138   : > { %v642_v60 = vmul.f32 %v4030_v6, %v603_v43  ;;  %v657_v61 = vmul.f32 %v4030_v6, %v618_v46  ;;  %v658_v62 = vmul.f32 %v4030_v6, %v619_v47  ;;  %v4090_v2 = vpack.c.bf16 %v679_v51, %v678_v50  ;;  %v622_v17 = vld [vmem:[%s4001_s1 + $0xd0] sm:$0xff]  ;;  %v609_v33 = vld [vmem:[%s4001_s1 + $0x68] sm:$0xff]  ;;  %v624_v34 = vld [vmem:[%s4001_s1 + $0xe0] sm:$0xff]  ;;  %p3428_p8 = pnand %p3427_p9, %p3421_p0 }
 0x139   : > { %2834 = vmatpush3.bf16.msra.mxu0 %v3139_v3  ;;  %2982 = vmatpush3.bf16.msra.mxu1 %v3139_v3  ;;  %v643_v3 = vmul.f32 %v4030_v6, %v604_v56  ;;  %v644_v4 = vmul.f32 %v4030_v6, %v605_v57  ;;  %v4095_v7 = vpack.c.bf16 %v695_v54, %v694_v53  ;;  %v3149_v22 = vld [vmem:[#allocation11 + $0x10] sm:$0xff]   ;;  %v3150_v37 = vld [vmem:[#allocation10 + $0x18] sm:$0xff]   ;;  %v3152_v54 = vld [vmem:[#allocation10 + $0x20] sm:$0xff]  }
 0x13a   : > { %2835 = vmatprep.subr.bf16.mxu0 %v3140_v16  ;;  %2975 = vmatprep.subr.bf16.mxu1 %v3140_v16  ;;  %v680_v8 = vadd.f32 %v4034_v9, %v641_v55  ;;  %v659_v10 = vmul.f32 %v4030_v6, %v620_v63  ;;  %v660_v11 = vmul.f32 %v4030_v6, %v621_v0  ;;  %v3151_v38 = vld [vmem:[#allocation11 + $0x18] sm:$0xff]   ;;  %v610_v46 = vld [vmem:[%s4001_s1 + $0x70] sm:$0xff]  ;;  %v3153_v55 = vld [vmem:[#allocation11 + $0x20] sm:$0xff]  }
 0x13b   : > { %v681_v13 = vadd.f32 %v4034_v9, %v642_v60  ;;  %v696_v14 = vadd.f32 %v4034_v9, %v657_v61  ;;  %v697_v15 = vadd.f32 %v4034_v9, %v658_v62  ;;  %v682_v23 = vadd.f32 %v4034_v9, %v643_v3  ;;  %v626_v50 = vld [vmem:[%s4001_s1 + $0xf0] sm:$0xff]  ;;  %v627_v51 = vld [vmem:[%s4001_s1 + $0xf8] sm:$0xff] }
 0x13c   : > { %v646_v25 = vmul.f32 %v4030_v6, %v607_v12  ;;  %v698_v26 = vadd.f32 %v4034_v9, %v659_v10  ;;  %v699_v27 = vadd.f32 %v4034_v9, %v660_v11  ;;  %v661_v31 = vmul.f32 %v4030_v6, %v622_v17  ;;  %v3154_v3 = vld [vmem:[#allocation10 + $0x28] sm:$0xff]   ;;  %v3158_v17 = vld [vmem:[#allocation10 + $0x38] sm:$0xff]  }
 0x13d   : > { %2836 = vmatpush3.bf16.msra.mxu0 %v3140_v16  ;;  %2983 = vmatpush3.bf16.msra.mxu1 %v3140_v16  ;;  %v645_v16 = vmul.f32 %v4030_v6, %v606_v5  ;;  %v4117_v29 = vpack.c.bf16 %v681_v13, %v680_v8  ;;  %v4119_v30 = vpack.c.bf16 %v697_v15, %v696_v14  ;;  %v3157_v14 = vld [vmem:[#allocation11 + $0x30] sm:$0xff]  }
 0x13e   : > { %2837 = vmatprep.subr.bf16.mxu0 %v3141_v21  ;;  %2976 = vmatprep.subr.bf16.mxu1 %v3141_v21  ;;  %v662_v32 = vmul.f32 %v4030_v6, %v623_v18  ;;  %v685_v40 = vadd.f32 %v4034_v9, %v646_v25  ;;  %v647_v41 = vmul.f32 %v4030_v6, %v608_v28  ;;  %v3159_v18 = vld [vmem:[#allocation11 + $0x38] sm:$0xff]  }
 0x13f   : > { %v684_v36 = vadd.f32 %v4034_v9, %v645_v16  ;;  %v4131_v42 = vpack.c.bf16 %v699_v27, %v698_v26  ;;  %v648_v43 = vmul.f32 %v4030_v6, %v609_v33  ;;  %v663_v44 = vmul.f32 %v4030_v6, %v624_v34 }
 0x140   : > { %v700_v47 = vadd.f32 %v4034_v9, %v661_v31  ;;  %v686_v56 = vadd.f32 %v4034_v9, %v647_v41  ;;  %v649_v57 = vmul.f32 %v4030_v6, %v610_v46  ;;  %v665_v0 = vmul.f32 %v4030_v6, %v626_v50 }
 0x141   : > { %2838 = vmatpush3.bf16.msra.mxu0 %v3141_v21  ;;  %2984 = vmatpush3.bf16.msra.mxu1 %v3141_v21  ;;  %v3148_v21 = vld [vmem:[#allocation10 + $0x10] sm:$0xff]   ;;  %v711_v53 = vpack.c.bf16 %v685_v40, %v684_v36  ;;  %v702_v60 = vadd.f32 %v4034_v9, %v663_v44 }
 0x142   : > { %2839 = vmatprep.subr.bf16.mxu0 %v3142_v24  ;;  %2977 = vmatprep.subr.bf16.mxu1 %v3142_v24  ;;  %v688_v10 = vadd.f32 %v4034_v9, %v649_v57  ;;  %v704_v12 = vadd.f32 %v4034_v9, %v665_v0 }
 0x145   : > { %2840 = vmatpush3.bf16.msra.mxu0 %v3142_v24  ;;  %2985 = vmatpush3.bf16.msra.mxu1 %v3142_v24  ;;  %v683_v24 = vadd.f32 %v4034_v9, %v644_v4  ;;  %v3155_v4 = vld [vmem:[#allocation11 + $0x28] sm:$0xff]  }
 0x146   : > { %2841 = vmatprep.subr.bf16.mxu0 %v3143_v35  ;;  %2978 = vmatprep.subr.bf16.mxu1 %v3143_v35 }
 0x147   : > { %v4127_v39 = vpack.c.bf16 %v683_v24, %v682_v23 }
 0x149   : > { %2842 = vmatpush3.bf16.msra.mxu0 %v3143_v35  ;;  %2986 = vmatpush3.bf16.msra.mxu1 %v3143_v35  ;;  %v625_v35 = vld [vmem:[%s4001_s1 + $0xe8] sm:$0xff] }
 0x14a   : > { %2875 = vmatprep.subr.bf16.mxu1 %v3144_v48  ;;  %2923 = vmatprep.subr.bf16.mxu0 %v3145_v49  ;;  %v664_v45 = vmul.f32 %v4030_v6, %v625_v35 }
 0x14c   : > { %2844 = vmatmul.mubr.bf16.vlgmr.msra.gmra.mrb[0].mxu0 %v4076_v52  ;;  %2860 = vmatmul.mubr.bf16.vlgmr.msra.gmra.mrb[0].mxu1 %v4083_v58  ;;  %v703_v61 = vadd.f32 %v4034_v9, %v664_v45 }
 0x14d   : > { %2876 = vmatpush3.bf16.msra.mxu1 %v3144_v48  ;;  %2924 = vmatpush3.bf16.msra.mxu0 %v3145_v49  ;;  %v701_v48 = vadd.f32 %v4034_v9, %v662_v32  ;;  %v611_v49 = vld [vmem:[%s4001_s1 + $0x78] sm:$0xff] }
 0x14e   : > { %2877 = vmatprep.subr.bf16.mxu1 %v3146_v59  ;;  %2925 = vmatprep.subr.bf16.mxu0 %v3147_v1  ;;  %v650_v63 = vmul.f32 %v4030_v6, %v611_v49  ;;  %v720_v8 = vpack.c.bf16 %v703_v61, %v702_v60 }
 0x14f   : > { %2847 = vmatprep.mubr.bf16.mxu0 %v4090_v2  ;;  %2863 = vmatprep.mubr.bf16.mxu1 %v4095_v7  ;;  %v4151_v62 = vpack.c.bf16 %v701_v48, %v700_v47 }
 0x150   : > { %v689_v11 = vadd.f32 %v4034_v9, %v650_v63 }
 0x151   : > { %2878 = vmatpush3.bf16.msra.mxu1 %v3146_v59  ;;  %2926 = vmatpush3.bf16.msra.mxu0 %v3147_v1  ;;  %v687_v59 = vadd.f32 %v4034_v9, %v648_v43  ;;  %v666_v1 = vmul.f32 %v4030_v6, %v627_v51  ;;  %v3156_v6 = vld [vmem:[#allocation10 + $0x30] sm:$0xff]  }
 0x152   : > { %2879 = vmatprep.subr.bf16.mxu1 %v3148_v21  ;;  %2927 = vmatprep.subr.bf16.mxu0 %v3149_v22  ;;  %v713_v15 = vpack.c.bf16 %v689_v11, %v688_v10 }
 0x153   : > { %v712_v5 = vpack.c.bf16 %v687_v59, %v686_v56  ;;  %v705_v13 = vadd.f32 %v4034_v9, %v666_v1  ;;  %v4183_v9 = vld [vmem:[#allocation13] ss:$0 sm:$0xff] }
 0x154   : > { %2848 = vmatmul.mubr.bf16.gmra.mrb[4].mxu0 %v4117_v29  ;;  %2864 = vmatmul.mubr.bf16.gmra.mrb[4].mxu1 %v4119_v30 }
 0x155   : > { %2880 = vmatpush3.bf16.msra.mxu1 %v3148_v21  ;;  %2928 = vmatpush3.bf16.msra.mxu0 %v3149_v22  ;;  %v721_v16 = vpack.c.bf16 %v705_v13, %v704_v12 }
 0x156   : > { %2881 = vmatprep.subr.bf16.mxu1 %v3150_v37  ;;  %2929 = vmatprep.subr.bf16.mxu0 %v3151_v38 }
 0x157   : > { %2851 = vmatprep.mubr.bf16.mxu0 %v4127_v39  ;;  %2867 = vmatprep.mubr.bf16.mxu1 %v4131_v42 }
 0x159   : > { %2882 = vmatpush3.bf16.msra.mxu1 %v3150_v37  ;;  %2930 = vmatpush3.bf16.msra.mxu0 %v3151_v38 }
 0x15a   : > { %2883 = vmatprep.subr.bf16.mxu1 %v3152_v54  ;;  %2931 = vmatprep.subr.bf16.mxu0 %v3153_v55 }
 0x15c   : > { %2852 = vmatmul.mubr.bf16.gmra.mrb[8].mxu0 %v711_v53  ;;  %2868 = vmatmul.mubr.bf16.gmra.mrb[8].mxu1 %v4151_v62 }
 0x15d   : > { %2884 = vmatpush3.bf16.msra.mxu1 %v3152_v54  ;;  %2932 = vmatpush3.bf16.msra.mxu0 %v3153_v55 }
 0x15e   : > { %2885 = vmatprep.subr.bf16.mxu1 %v3154_v3  ;;  %2933 = vmatprep.subr.bf16.mxu0 %v3155_v4 }
 0x15f   : > { %2855 = vmatprep.mubr.bf16.mxu0 %v712_v5  ;;  %2871 = vmatprep.mubr.bf16.mxu1 %v720_v8 }
 0x161   : > { %2886 = vmatpush3.bf16.msra.mxu1 %v3154_v3  ;;  %2934 = vmatpush3.bf16.msra.mxu0 %v3155_v4 }
 0x162   : > { %2887 = vmatprep.subr.bf16.mxu1 %v3156_v6  ;;  %2935 = vmatprep.subr.bf16.mxu0 %v3157_v14 }
 0x164   : > { %2856 = vmatmul.mubr.bf16.gmra.mrb[12].mxu0 %v713_v15  ;;  %2872 = vmatmul.mubr.bf16.gmra.mrb[12].mxu1 %v721_v16 }
 0x165   : > { %2888 = vmatpush3.bf16.msra.mxu1 %v3156_v6  ;;  %2936 = vmatpush3.bf16.msra.mxu0 %v3157_v14 }
 0x166   : > { %2889 = vmatprep.subr.bf16.mxu1 %v3158_v17  ;;  %2937 = vmatprep.subr.bf16.mxu0 %v3159_v18 }
 0x167   : > { %2891 = vmatprep.mubr.bf16.mxu1 %v4044_v19  ;;  %2939 = vmatprep.mubr.bf16.mxu0 %v4044_v19 }
 0x169   : > { %2890 = vmatpush3.bf16.msra.mxu1 %v3158_v17  ;;  %2938 = vmatpush3.bf16.msra.mxu0 %v3159_v18 }
 0x16c   : > { %2892 = vmatmul.mubr.bf16.vlgmr.msra.gmra.mrb[16].mxu1 %v4076_v52  ;;  %2940 = vmatmul.mubr.bf16.vlgmr.msra.gmra.mrb[16].mxu0 %v4076_v52 }
 0x16d   : > { %2895 = vmatprep.mubr.bf16.mxu1 %v4090_v2  ;;  %2943 = vmatprep.mubr.bf16.mxu0 %v4090_v2 }
 0x174   : > { %2896 = vmatmul.mubr.bf16.gmra.mrb[20].mxu1 %v4117_v29  ;;  %2944 = vmatmul.mubr.bf16.gmra.mrb[20].mxu0 %v4117_v29 }
 0x175   : > { %2899 = vmatprep.mubr.bf16.mxu1 %v4127_v39  ;;  %2947 = vmatprep.mubr.bf16.mxu0 %v4127_v39 }
 0x17c   : > { %2900 = vmatmul.mubr.bf16.gmra.mrb[24].mxu1 %v711_v53  ;;  %2948 = vmatmul.mubr.bf16.gmra.mrb[24].mxu0 %v711_v53 }
 0x17d   : > { %2903 = vmatprep.mubr.bf16.mxu1 %v712_v5  ;;  %2951 = vmatprep.mubr.bf16.mxu0 %v712_v5 }
 0x184   : > { %2904 = vmatmul.mubr.bf16.gmra.mrb[28].mxu1 %v713_v15  ;;  %2952 = vmatmul.mubr.bf16.gmra.mrb[28].mxu0 %v713_v15 }
 0x185   : > { %2907 = vmatprep.mubr.bf16.mxu1 %v4046_v20  ;;  %2955 = vmatprep.mubr.bf16.mxu0 %v4046_v20 }
 0x18c   : > { %2908 = vmatmul.mubr.bf16.gmra.mrb[32].mxu1 %v4083_v58  ;;  %2956 = vmatmul.mubr.bf16.gmra.mrb[32].mxu0 %v4083_v58 }
 0x18d   : > { %2911 = vmatprep.mubr.bf16.mxu1 %v4095_v7  ;;  %2959 = vmatprep.mubr.bf16.mxu0 %v4095_v7 }
 0x194   : > { %2912 = vmatmul.mubr.bf16.gmra.mrb[36].mxu1 %v4119_v30  ;;  %2960 = vmatmul.mubr.bf16.gmra.mrb[36].mxu0 %v4119_v30 }
 0x195   : > { %2915 = vmatprep.mubr.bf16.mxu1 %v4131_v42  ;;  %2963 = vmatprep.mubr.bf16.mxu0 %v4131_v42 }
 0x19c   : > { %2916 = vmatmul.mubr.bf16.gmra.mrb[40].mxu1 %v4151_v62  ;;  %2964 = vmatmul.mubr.bf16.gmra.mrb[40].mxu0 %v4151_v62 }
 0x19d   : > { %2919 = vmatprep.mubr.bf16.mxu1 %v720_v8  ;;  %2967 = vmatprep.mubr.bf16.mxu0 %v720_v8 }
 0x1a4   : > { %2920 = vmatmul.mubr.bf16.gmra.mrb[44].mxu1 %v721_v16  ;;  %2968 = vmatmul.mubr.bf16.gmra.mrb[44].mxu0 %v721_v16 }
 0x21f   : > { %v2845_v19 = vpop.f32.mrb[0].mxu0  ;;  %v2861_v20 = vpop.f32.mrb[0].mxu1 }
 0x220   : > { %v836_v52 = vadd.f32 %v2845_v19, %v4183_v9  ;;  %v827_v58 = vpop.f32.mrb[1].mxu0  ;;  %v891_v2 = vpop.f32.mrb[1].mxu1  ;;  %v900_v22 = vadd.f32 %v2861_v20, %v4183_v9 }
 0x221   : > { %v2846_v7 = vpop.f32.mrb[2].mxu0  ;;  %v2862_v21 = vpop.f32.mrb[2].mxu1  ;;  %v828_v27 = vadd.f32 %v4183_v9, %v827_v58  ;;  %v892_v28 = vadd.f32 %v4183_v9, %v891_v2 }
 0x222   : > { %v839_v23 = vadd.f32 %v2846_v7, %v4183_v9  ;;  %v903_v24 = vadd.f32 %v2862_v21, %v4183_v9  ;;  %v830_v25 = vpop.f32.mrb[3].mxu0  ;;  %v894_v26 = vpop.f32.mrb[3].mxu1 }
 0x223   : > { %v831_v29 = vadd.f32 %v4183_v9, %v830_v25  ;;  %v895_v30 = vadd.f32 %v4183_v9, %v894_v26 }
 0x224   : > { %v2478_v31 = vpack.c.bf16 %v839_v23, %v836_v52  ;;  %v2518_v32 = vpack.c.bf16 %v903_v24, %v900_v22 }
 0x225   : > { %v2473_v33 = vpack.c.bf16 %v831_v29, %v828_v27  ;;  %v2513_v34 = vpack.c.bf16 %v895_v30, %v892_v28 }
 0x226   : > { %2710 = vst [vmem:[%s4197_s5 + $0x8] sm:$0xff] %v2478_v31   ;;  %2718 = vst [vmem:[%s4197_s5 + $0x48] sm:$0xff] %v2518_v32   ;;  %v4239_v32 = vld [vmem:[#allocation16] ss:$0 sm:$0xff] }
 0x227   : > { %2474 = vst [vmem:[%s4197_s5] sm:$0xff] %v2473_v33   ;;  %2717 = vst [vmem:[%s4197_s5 + $0x40] sm:$0xff] %v2513_v34   ;;  %v2849_v35 = vpop.f32.mrb[4].mxu0  ;;  %v2865_v36 = vpop.f32.mrb[4].mxu1  ;;  %v4253_v33 = vld [vmem:[#allocation14] ss:$0 sm:$0xff] }
 0x228   : > { %v852_v37 = vadd.f32 %v2849_v35, %v4183_v9  ;;  %v843_v38 = vpop.f32.mrb[5].mxu0  ;;  %v907_v39 = vpop.f32.mrb[5].mxu1  ;;  %v916_v42 = vadd.f32 %v2865_v36, %v4183_v9 }
 0x229   : > { %v2850_v40 = vpop.f32.mrb[6].mxu0  ;;  %v2866_v41 = vpop.f32.mrb[6].mxu1  ;;  %v844_v47 = vadd.f32 %v4183_v9, %v843_v38  ;;  %v908_v48 = vadd.f32 %v4183_v9, %v907_v39 }
 0x22a   : > { %v855_v43 = vadd.f32 %v2850_v40, %v4183_v9  ;;  %v919_v44 = vadd.f32 %v2866_v41, %v4183_v9  ;;  %v846_v45 = vpop.f32.mrb[7].mxu0  ;;  %v910_v46 = vpop.f32.mrb[7].mxu1 }
 0x22b   : > { %v847_v49 = vadd.f32 %v4183_v9, %v846_v45  ;;  %v911_v50 = vadd.f32 %v4183_v9, %v910_v46 }
 0x22c   : > { %v2488_v51 = vpack.c.bf16 %v855_v43, %v852_v37  ;;  %v2528_v53 = vpack.c.bf16 %v919_v44, %v916_v42 }
 0x22d   : > { %v2483_v54 = vpack.c.bf16 %v847_v49, %v844_v47  ;;  %v2523_v55 = vpack.c.bf16 %v911_v50, %v908_v48 }
 0x22e   : > { %2712 = vst [vmem:[%s4197_s5 + $0x18] sm:$0xff] %v2488_v51   ;;  %2720 = vst [vmem:[%s4197_s5 + $0x58] sm:$0xff] %v2528_v53  }
 0x22f   : > { %2711 = vst [vmem:[%s4197_s5 + $0x10] sm:$0xff] %v2483_v54   ;;  %2719 = vst [vmem:[%s4197_s5 + $0x50] sm:$0xff] %v2523_v55   ;;  %v2853_v56 = vpop.f32.mrb[8].mxu0  ;;  %v2869_v57 = vpop.f32.mrb[8].mxu1 }
 0x230   : > { %v868_v59 = vadd.f32 %v2853_v56, %v4183_v9  ;;  %v859_v60 = vpop.f32.mrb[9].mxu0  ;;  %v923_v61 = vpop.f32.mrb[9].mxu1  ;;  %v932_v0 = vadd.f32 %v2869_v57, %v4183_v9 }
 0x231   : > { %v2854_v62 = vpop.f32.mrb[10].mxu0  ;;  %v2870_v63 = vpop.f32.mrb[10].mxu1  ;;  %v860_v8 = vadd.f32 %v4183_v9, %v859_v60  ;;  %v924_v10 = vadd.f32 %v4183_v9, %v923_v61 }
 0x232   : > { %v871_v1 = vadd.f32 %v2854_v62, %v4183_v9  ;;  %v935_v3 = vadd.f32 %v2870_v63, %v4183_v9  ;;  %v862_v4 = vpop.f32.mrb[11].mxu0  ;;  %v926_v5 = vpop.f32.mrb[11].mxu1 }
 0x233   : > { %v863_v11 = vadd.f32 %v4183_v9, %v862_v4  ;;  %v927_v12 = vadd.f32 %v4183_v9, %v926_v5 }
 0x234   : > { %v2498_v13 = vpack.c.bf16 %v871_v1, %v868_v59  ;;  %v2538_v6 = vpack.c.bf16 %v935_v3, %v932_v0 }
 0x235   : > { %v2493_v14 = vpack.c.bf16 %v863_v11, %v860_v8  ;;  %v2533_v15 = vpack.c.bf16 %v927_v12, %v924_v10 }
 0x236   : > { %2714 = vst [vmem:[%s4197_s5 + $0x28] sm:$0xff] %v2498_v13   ;;  %2722 = vst [vmem:[%s4197_s5 + $0x68] sm:$0xff] %v2538_v6  }
 0x237   : > { %2713 = vst [vmem:[%s4197_s5 + $0x20] sm:$0xff] %v2493_v14   ;;  %2721 = vst [vmem:[%s4197_s5 + $0x60] sm:$0xff] %v2533_v15   ;;  %v2857_v16 = vpop.f32.mrb[12].mxu0  ;;  %v2873_v17 = vpop.f32.mrb[12].mxu1 }
 0x238   : > { %v884_v18 = vadd.f32 %v2857_v16, %v4183_v9  ;;  %v875_v19 = vpop.f32.mrb[13].mxu0  ;;  %v939_v20 = vpop.f32.mrb[13].mxu1  ;;  %v948_v2 = vadd.f32 %v2873_v17, %v4183_v9 }
 0x239   : > { %v2858_v52 = vpop.f32.mrb[14].mxu0  ;;  %v2874_v58 = vpop.f32.mrb[14].mxu1  ;;  %v876_v24 = vadd.f32 %v4183_v9, %v875_v19  ;;  %v940_v25 = vadd.f32 %v4183_v9, %v939_v20 }
 0x23a   : > { %v887_v7 = vadd.f32 %v2858_v52, %v4183_v9  ;;  %v951_v21 = vadd.f32 %v2874_v58, %v4183_v9  ;;  %v878_v22 = vpop.f32.mrb[15].mxu0  ;;  %v942_v23 = vpop.f32.mrb[15].mxu1 }
 0x23b   : > { %v879_v26 = vadd.f32 %v4183_v9, %v878_v22  ;;  %v943_v27 = vadd.f32 %v4183_v9, %v942_v23 }
 0x23c   : > { %v2508_v28 = vpack.c.bf16 %v887_v7, %v884_v18  ;;  %v2548_v29 = vpack.c.bf16 %v951_v21, %v948_v2 }
 0x23d   : > { %v2503_v30 = vpack.c.bf16 %v879_v26, %v876_v24  ;;  %v2543_v31 = vpack.c.bf16 %v943_v27, %v940_v25 }
 0x23e   : > { %2716 = vst [vmem:[%s4197_s5 + $0x38] sm:$0xff] %v2508_v28   ;;  %2724 = vst [vmem:[%s4197_s5 + $0x78] sm:$0xff] %v2548_v29  }
 0x23f   : > { %2715 = vst [vmem:[%s4197_s5 + $0x30] sm:$0xff] %v2503_v30   ;;  %2723 = vst [vmem:[%s4197_s5 + $0x70] sm:$0xff] %v2543_v31   ;;  %v2893_v9 = vpop.f32.mrb[16].mxu1  ;;  %v2941_v34 = vpop.f32.mrb[16].mxu0 }
 0x240   : > { %v1620_v35 = vadd.f32 %v2941_v34, %v4239_v32  ;;  %v1219_v36 = vpop.f32.mrb[17].mxu1  ;;  %v1611_v37 = vpop.f32.mrb[17].mxu0 }
 0x241   : > { %3431 = shalt.err (!%p3428_p8)
}
 0x242   : > { %s3432_s1 = scalar_lea.hbm %s4245_s9, 2048  ;;  %s3436_s22 = scalar_lea.hbm %s4561_s26, 4096 }
 0x243   : > { %p3433_p6 = scmp.ne.s32.totalorder %s4245_s9, %s3432_s1  ;;  %p3437_p7 = scmp.lt.u32.totalorder %s4245_s9, %s4561_s26 }
 0x244   : > { %p3438_p2 = scmp.lt.u32.totalorder %s3436_s22, %s3432_s1  ;;  %p3440_p11 = scmp.lt.u32.totalorder %s3432_s1, %s4245_s9 }
 0x245   : > { %p3434_p13 = pnand %p3433_p6, %p4562_p5 }
 0x246   : > { %p3439_p12 = por %p3438_p2, %p3437_p7 }
 0x247   : > { %p3435_p4 = pneg %p3434_p13 }
 0x248   : > { %p3441_p1 = por %p3440_p11, %p3439_p12 }
 0x24a   : > { %p3442_p0 = pnand %p3441_p1, %p3435_p4 }
 0x24c   : > { %3445 = shalt.err (!%p3442_p0)
}
 0x24d   : > { %s3592_s27 = smov 64   ;;  %s3593_s25 = smov 4   ;;  %v2894_v38 = vpop.f32.mrb[18].mxu1  ;;  %v2942_v39 = vpop.f32.mrb[18].mxu0  ;;  %v1228_v40 = vadd.f32 %v2893_v9, %v4253_v33  ;;  %v1220_v45 = vadd.f32 %v4253_v33, %v1219_v36  ;;  %v1612_v46 = vadd.f32 %v4239_v32, %v1611_v37 }
 0x24e   : > { %3017 = dma.vmem_to_hbm [thread:$0]  (%p4562_p5), %s4247_s16, 2048, %s4245_s9, %s1899_s24, %s3592_s27, %s3592_s27, %s3593_s25   ;;  %v1231_v41 = vadd.f32 %v2894_v38, %v4253_v33  ;;  %v1623_v42 = vadd.f32 %v2942_v39, %v4239_v32  ;;  %v1222_v43 = vpop.f32.mrb[19].mxu1  ;;  %v1614_v44 = vpop.f32.mrb[19].mxu0 }
 0x24f   : > { %v1223_v47 = vadd.f32 %v4253_v33, %v1222_v43  ;;  %v1615_v48 = vadd.f32 %v4239_v32, %v1614_v44  ;;  %s4291_s7 = scalar_lea.vmem [#allocation18], %s4187_s12  ;;  %s4295_s16 = scalar_lea.vmem [#allocation20], %s4187_s12  ;;  %v2897_v54 = vpop.f32.mrb[20].mxu1  ;;  %v2945_v55 = vpop.f32.mrb[20].mxu0 }
 0x250   : > { %v2558_v49 = vpack.c.bf16 %v1231_v41, %v1228_v40  ;;  %v2638_v50 = vpack.c.bf16 %v1623_v42, %v1620_v35  ;;  %v1636_v56 = vadd.f32 %v2945_v55, %v4239_v32  ;;  %v1235_v57 = vpop.f32.mrb[21].mxu1  ;;  %v1627_v59 = vpop.f32.mrb[21].mxu0  ;;  %v1244_v62 = vadd.f32 %v2897_v54, %v4253_v33  ;;  %s1942_s12 = sshll.u32 %s4291_s7, 4  ;;  %s1960_s9 = sshll.u32 %s4295_s16, 4  ;;  %s4388_s12 = int_to_ptr.vmem [resolvable:$true] %s1942_s12  ;;  %s4398_s9 = int_to_ptr.vmem [resolvable:$true] %s1960_s9 }
 0x251   : > { %v2553_v51 = vpack.c.bf16 %v1223_v47, %v1220_v45  ;;  %v2633_v53 = vpack.c.bf16 %v1615_v48, %v1612_v46  ;;  %v2898_v60 = vpop.f32.mrb[22].mxu1  ;;  %v2946_v61 = vpop.f32.mrb[22].mxu0  ;;  %v1236_v4 = vadd.f32 %v4253_v33, %v1235_v57  ;;  %v1628_v5 = vadd.f32 %v4239_v32, %v1627_v59  ;;  %s4563_s10 = sld [smem:[#allocation39_spill]]  ;;  %s4564_s29 = sld [smem:[#allocation40_spill]] }
 0x252   : > { %2725 = vst [vmem:[%s4291_s7 + $0x8] sm:$0xff] %v2558_v49   ;;  %2740 = vst [vmem:[%s4295_s16 + $0x8] sm:$0xff] %v2638_v50   ;;  %v1247_v63 = vadd.f32 %v2898_v60, %v4253_v33  ;;  %v1639_v0 = vadd.f32 %v2946_v61, %v4239_v32  ;;  %v1238_v1 = vpop.f32.mrb[23].mxu1  ;;  %v1630_v3 = vpop.f32.mrb[23].mxu0  ;;  %s4404_s22 = scalar_lea.sflag [#allocation19], %s499_s3  ;;  %s3446_s5 = scalar_lea.vmem %s4388_s12, 2048 }
 0x253   : > { %2554 = vst [vmem:[%s4291_s7] sm:$0xff] %v2553_v51   ;;  %2634 = vst [vmem:[%s4295_s16] sm:$0xff] %v2633_v53   ;;  %v1239_v8 = vadd.f32 %v4253_v33, %v1238_v1  ;;  %v1631_v10 = vadd.f32 %v4239_v32, %v1630_v3  ;;  %v2901_v14 = vpop.f32.mrb[24].mxu1  ;;  %v2949_v15 = vpop.f32.mrb[24].mxu0  ;;  %p3447_p3 = scmp.ne.s32.totalorder %s4388_s12, %s3446_s5  ;;  %s3594_s19 = smov [#allocation18]  }
 0x254   : > { %v2568_v11 = vpack.c.bf16 %v1247_v63, %v1244_v62  ;;  %v2648_v12 = vpack.c.bf16 %v1639_v0, %v1636_v56  ;;  %v1652_v16 = vadd.f32 %v2949_v15, %v4239_v32  ;;  %v1251_v17 = vpop.f32.mrb[25].mxu1  ;;  %v1643_v18 = vpop.f32.mrb[25].mxu0  ;;  %v1260_v52 = vadd.f32 %v2901_v14, %v4253_v33  ;;  %s3450_s24 = sshll.u32 %s3594_s19, 4  ;;  %s3451_s24 = int_to_ptr.vmem [resolvable:$false] %s3450_s24 }
 0x255   : > { %v2563_v13 = vpack.c.bf16 %v1239_v8, %v1236_v4  ;;  %v2643_v6 = vpack.c.bf16 %v1631_v10, %v1628_v5  ;;  %v2902_v19 = vpop.f32.mrb[26].mxu1  ;;  %v2950_v20 = vpop.f32.mrb[26].mxu0  ;;  %v1252_v22 = vadd.f32 %v4253_v33, %v1251_v17  ;;  %v1644_v23 = vadd.f32 %v4239_v32, %v1643_v18  ;;  %p3448_p10 = pnand %p3447_p3, %p4562_p5  ;;  %s3452_s15 = scalar_lea.vmem %s3451_s24, 4096 }
 0x256   : > { %2727 = vst [vmem:[%s4291_s7 + $0x18] sm:$0xff] %v2568_v11   ;;  %2742 = vst [vmem:[%s4295_s16 + $0x18] sm:$0xff] %v2648_v12   ;;  %v1263_v58 = vadd.f32 %v2902_v19, %v4253_v33  ;;  %v1655_v2 = vadd.f32 %v2950_v20, %v4239_v32  ;;  %v1254_v7 = vpop.f32.mrb[27].mxu1  ;;  %v1646_v21 = vpop.f32.mrb[27].mxu0  ;;  %p3453_p8 = scmp.lt.s32.totalorder %s4388_s12, %s3451_s24  ;;  %p3454_p6 = scmp.lt.s32.totalorder %s3452_s15, %s3446_s5 }
 0x257   : > { %2726 = vst [vmem:[%s4291_s7 + $0x10] sm:$0xff] %v2563_v13   ;;  %2741 = vst [vmem:[%s4295_s16 + $0x10] sm:$0xff] %v2643_v6   ;;  %v1255_v24 = vadd.f32 %v4253_v33, %v1254_v7  ;;  %v1647_v25 = vadd.f32 %v4239_v32, %v1646_v21  ;;  %v2905_v30 = vpop.f32.mrb[28].mxu1  ;;  %v2953_v31 = vpop.f32.mrb[28].mxu0  ;;  %s4386_s14 = scalar_lea.hbm %s4563_s10, %s4232_s11  ;;  %s4396_s30 = scalar_lea.hbm %s4564_s29, %s4232_s11 }
 0x258   : > { %v2578_v26 = vpack.c.bf16 %v1263_v58, %v1260_v52  ;;  %v2658_v27 = vpack.c.bf16 %v1655_v2, %v1652_v16  ;;  %v1668_v9 = vadd.f32 %v2953_v31, %v4239_v32  ;;  %v1267_v34 = vpop.f32.mrb[29].mxu1  ;;  %v1659_v35 = vpop.f32.mrb[29].mxu0  ;;  %v1276_v38 = vadd.f32 %v2905_v30, %v4253_v33  ;;  %p3449_p9 = pneg %p3448_p10  ;;  %p3455_p13 = por %p3454_p6, %p3453_p8 }
 0x259   : > { %v2573_v28 = vpack.c.bf16 %v1255_v24, %v1252_v22  ;;  %v2653_v29 = vpack.c.bf16 %v1647_v25, %v1644_v23  ;;  %v2906_v36 = vpop.f32.mrb[30].mxu1  ;;  %v2954_v37 = vpop.f32.mrb[30].mxu0  ;;  %v1268_v43 = vadd.f32 %v4253_v33, %v1267_v34  ;;  %v1660_v44 = vadd.f32 %v4239_v32, %v1659_v35 }
 0x25a   : > { %2729 = vst [vmem:[%s4291_s7 + $0x28] sm:$0xff] %v2578_v26   ;;  %2744 = vst [vmem:[%s4295_s16 + $0x28] sm:$0xff] %v2658_v27   ;;  %v1279_v39 = vadd.f32 %v2906_v36, %v4253_v33  ;;  %v1671_v40 = vadd.f32 %v2954_v37, %v4239_v32  ;;  %v1270_v41 = vpop.f32.mrb[31].mxu1  ;;  %v1662_v42 = vpop.f32.mrb[31].mxu0  ;;  %p3456_p4 = pnand %p3455_p13, %p3449_p9 }
 0x25b   : > { %2728 = vst [vmem:[%s4291_s7 + $0x20] sm:$0xff] %v2573_v28   ;;  %2743 = vst [vmem:[%s4295_s16 + $0x20] sm:$0xff] %v2653_v29   ;;  %v1271_v45 = vadd.f32 %v4253_v33, %v1270_v41  ;;  %v1663_v46 = vadd.f32 %v4239_v32, %v1662_v42 }
 0x25c   : > { %v2588_v47 = vpack.c.bf16 %v1279_v39, %v1276_v38  ;;  %v2668_v48 = vpack.c.bf16 %v1671_v40, %v1668_v9 }
 0x25d   : > { %v2583_v49 = vpack.c.bf16 %v1271_v45, %v1268_v43  ;;  %v2663_v50 = vpack.c.bf16 %v1663_v46, %v1660_v44 }
 0x25e   : > { %2731 = vst [vmem:[%s4291_s7 + $0x38] sm:$0xff] %v2588_v47   ;;  %2746 = vst [vmem:[%s4295_s16 + $0x38] sm:$0xff] %v2668_v48  }
 0x25f   : > { %2730 = vst [vmem:[%s4291_s7 + $0x30] sm:$0xff] %v2583_v49   ;;  %2745 = vst [vmem:[%s4295_s16 + $0x30] sm:$0xff] %v2663_v50   ;;  %v2909_v51 = vpop.f32.mrb[32].mxu1  ;;  %v2957_v53 = vpop.f32.mrb[32].mxu0 }
 0x260   : > { %v1684_v54 = vadd.f32 %v2957_v53, %v4239_v32  ;;  %v1283_v55 = vpop.f32.mrb[33].mxu1  ;;  %v1675_v56 = vpop.f32.mrb[33].mxu0  ;;  %v1292_v60 = vadd.f32 %v2909_v51, %v4253_v33 }
 0x261   : > { %v2910_v57 = vpop.f32.mrb[34].mxu1  ;;  %v2958_v59 = vpop.f32.mrb[34].mxu0  ;;  %v1284_v1 = vadd.f32 %v4253_v33, %v1283_v55  ;;  %v1676_v3 = vadd.f32 %v4239_v32, %v1675_v56 }
 0x262   : > { %v1295_v61 = vadd.f32 %v2910_v57, %v4253_v33  ;;  %v1687_v62 = vadd.f32 %v2958_v59, %v4239_v32  ;;  %v1286_v63 = vpop.f32.mrb[35].mxu1  ;;  %v1678_v0 = vpop.f32.mrb[35].mxu0 }
 0x263   : > { %v1287_v4 = vadd.f32 %v4253_v33, %v1286_v63  ;;  %v1679_v5 = vadd.f32 %v4239_v32, %v1678_v0 }
 0x264   : > { %v2598_v8 = vpack.c.bf16 %v1295_v61, %v1292_v60  ;;  %v2678_v10 = vpack.c.bf16 %v1687_v62, %v1684_v54 }
 0x265   : > { %v2593_v11 = vpack.c.bf16 %v1287_v4, %v1284_v1  ;;  %v2673_v12 = vpack.c.bf16 %v1679_v5, %v1676_v3 }
 0x266   : > { %2733 = vst [vmem:[%s4291_s7 + $0x48] sm:$0xff] %v2598_v8   ;;  %2748 = vst [vmem:[%s4295_s16 + $0x48] sm:$0xff] %v2678_v10  }
 0x267   : > { %2732 = vst [vmem:[%s4291_s7 + $0x40] sm:$0xff] %v2593_v11   ;;  %2747 = vst [vmem:[%s4295_s16 + $0x40] sm:$0xff] %v2673_v12   ;;  %v2913_v13 = vpop.f32.mrb[36].mxu1  ;;  %v2961_v6 = vpop.f32.mrb[36].mxu0 }
 0x268   : > { %v1700_v14 = vadd.f32 %v2961_v6, %v4239_v32  ;;  %v1299_v15 = vpop.f32.mrb[37].mxu1  ;;  %v1691_v16 = vpop.f32.mrb[37].mxu0  ;;  %v1308_v19 = vadd.f32 %v2913_v13, %v4253_v33 }
 0x269   : > { %v2914_v17 = vpop.f32.mrb[38].mxu1  ;;  %v2962_v18 = vpop.f32.mrb[38].mxu0  ;;  %v1300_v7 = vadd.f32 %v4253_v33, %v1299_v15  ;;  %v1692_v21 = vadd.f32 %v4239_v32, %v1691_v16 }
 0x26a   : > { %v1311_v20 = vadd.f32 %v2914_v17, %v4253_v33  ;;  %v1703_v52 = vadd.f32 %v2962_v18, %v4239_v32  ;;  %v1302_v58 = vpop.f32.mrb[39].mxu1  ;;  %v1694_v2 = vpop.f32.mrb[39].mxu0 }
 0x26b   : > { %v1303_v22 = vadd.f32 %v4253_v33, %v1302_v58  ;;  %v1695_v23 = vadd.f32 %v4239_v32, %v1694_v2 }
 0x26c   : > { %v2608_v24 = vpack.c.bf16 %v1311_v20, %v1308_v19  ;;  %v2688_v25 = vpack.c.bf16 %v1703_v52, %v1700_v14 }
 0x26d   : > { %v2603_v26 = vpack.c.bf16 %v1303_v22, %v1300_v7  ;;  %v2683_v27 = vpack.c.bf16 %v1695_v23, %v1692_v21 }
 0x26e   : > { %2735 = vst [vmem:[%s4291_s7 + $0x58] sm:$0xff] %v2608_v24   ;;  %2750 = vst [vmem:[%s4295_s16 + $0x58] sm:$0xff] %v2688_v25  }
 0x26f   : > { %2734 = vst [vmem:[%s4291_s7 + $0x50] sm:$0xff] %v2603_v26   ;;  %2749 = vst [vmem:[%s4295_s16 + $0x50] sm:$0xff] %v2683_v27   ;;  %v2917_v28 = vpop.f32.mrb[40].mxu1  ;;  %v2965_v29 = vpop.f32.mrb[40].mxu0 }
 0x270   : > { %v1716_v30 = vadd.f32 %v2965_v29, %v4239_v32  ;;  %v1315_v31 = vpop.f32.mrb[41].mxu1  ;;  %v1707_v9 = vpop.f32.mrb[41].mxu0  ;;  %v1324_v36 = vadd.f32 %v2917_v28, %v4253_v33 }
 0x271   : > { %v2918_v34 = vpop.f32.mrb[42].mxu1  ;;  %v2966_v35 = vpop.f32.mrb[42].mxu0  ;;  %v1316_v41 = vadd.f32 %v4253_v33, %v1315_v31  ;;  %v1708_v42 = vadd.f32 %v4239_v32, %v1707_v9 }
 0x272   : > { %v1327_v37 = vadd.f32 %v2918_v34, %v4253_v33  ;;  %v1719_v38 = vadd.f32 %v2966_v35, %v4239_v32  ;;  %v1318_v39 = vpop.f32.mrb[43].mxu1  ;;  %v1710_v40 = vpop.f32.mrb[43].mxu0 }
 0x273   : > { %v1319_v43 = vadd.f32 %v4253_v33, %v1318_v39  ;;  %v1711_v44 = vadd.f32 %v4239_v32, %v1710_v40 }
 0x274   : > { %v2618_v45 = vpack.c.bf16 %v1327_v37, %v1324_v36  ;;  %v2698_v46 = vpack.c.bf16 %v1719_v38, %v1716_v30 }
 0x275   : > { %v2613_v47 = vpack.c.bf16 %v1319_v43, %v1316_v41  ;;  %v2693_v48 = vpack.c.bf16 %v1711_v44, %v1708_v42 }
 0x276   : > { %2737 = vst [vmem:[%s4291_s7 + $0x68] sm:$0xff] %v2618_v45   ;;  %2752 = vst [vmem:[%s4295_s16 + $0x68] sm:$0xff] %v2698_v46  }
 0x277   : > { %2736 = vst [vmem:[%s4291_s7 + $0x60] sm:$0xff] %v2613_v47   ;;  %2751 = vst [vmem:[%s4295_s16 + $0x60] sm:$0xff] %v2693_v48   ;;  %v2921_v49 = vpop.f32.mrb[44].mxu1  ;;  %v2969_v50 = vpop.f32.mrb[44].mxu0 }
 0x278   : > { %v1732_v51 = vadd.f32 %v2969_v50, %v4239_v32  ;;  %v1331_v53 = vpop.f32.mrb[45].mxu1  ;;  %v1723_v54 = vpop.f32.mrb[45].mxu0  ;;  %v1340_v57 = vadd.f32 %v2921_v49, %v4253_v33 }
 0x279   : > { %v2922_v55 = vpop.f32.mrb[46].mxu1  ;;  %v2970_v56 = vpop.f32.mrb[46].mxu0  ;;  %v1332_v63 = vadd.f32 %v4253_v33, %v1331_v53  ;;  %v1724_v0 = vadd.f32 %v4239_v32, %v1723_v54 }
 0x27a   : > { %v1343_v59 = vadd.f32 %v2922_v55, %v4253_v33  ;;  %v1735_v60 = vadd.f32 %v2970_v56, %v4239_v32  ;;  %v1334_v61 = vpop.f32.mrb[47].mxu1  ;;  %v1726_v62 = vpop.f32.mrb[47].mxu0 }
 0x27b   : > { %v1335_v1 = vadd.f32 %v4253_v33, %v1334_v61  ;;  %v1727_v3 = vadd.f32 %v4239_v32, %v1726_v62 }
 0x27c   : > { %v2628_v4 = vpack.c.bf16 %v1343_v59, %v1340_v57  ;;  %v2708_v5 = vpack.c.bf16 %v1735_v60, %v1732_v51 }
 0x27d   : > { %v2623_v8 = vpack.c.bf16 %v1335_v1, %v1332_v63  ;;  %v2703_v10 = vpack.c.bf16 %v1727_v3, %v1724_v0 }
 0x27e   : > { %2739 = vst [vmem:[%s4291_s7 + $0x78] sm:$0xff] %v2628_v4   ;;  %2754 = vst [vmem:[%s4295_s16 + $0x78] sm:$0xff] %v2708_v5  }
 0x27f   : > { %2738 = vst [vmem:[%s4291_s7 + $0x70] sm:$0xff] %v2623_v8   ;;  %2753 = vst [vmem:[%s4295_s16 + $0x70] sm:$0xff] %v2703_v10  }
 0x280   : > { %3459 = shalt.err (!%p3456_p4)
}
 0x281   : > { %s3460_s23 = scalar_lea.hbm %s4386_s14, 2048  ;;  %s3464_s7 = scalar_lea.hbm %s4563_s10, 4096 }
 0x282   : > { %p3461_p7 = scmp.ne.s32.totalorder %s4386_s14, %s3460_s23  ;;  %p3465_p11 = scmp.lt.u32.totalorder %s4386_s14, %s4563_s10 }
 0x283   : > { %p3466_p1 = scmp.lt.u32.totalorder %s3464_s7, %s3460_s23  ;;  %p3468_p3 = scmp.lt.u32.totalorder %s3460_s23, %s4386_s14 }
 0x284   : > { %p3462_p2 = pnand %p3461_p7, %p4562_p5 }
 0x285   : > { %p3467_p0 = por %p3466_p1, %p3465_p11 }
 0x286   : > { %p3463_p12 = pneg %p3462_p2 }
 0x287   : > { %p3469_p10 = por %p3468_p3, %p3467_p0 }
 0x289   : > { %p3470_p9 = pnand %p3469_p10, %p3463_p12 }
 0x28b   : > { %3473 = shalt.err (!%p3470_p9)
}
 0x28c   : > { %3018 = dma.vmem_to_hbm [thread:$0]  (%p4562_p5), %s4388_s12, 2048, %s4386_s14, %s4404_s22, %s3592_s27, %s3592_s27, %s3593_s25  }
 0x28d   : > { %s3474_s1 = scalar_lea.vmem %s4398_s9, 2048  ;;  %s3595_s5 = smov [#allocation20]  }
 0x28e   : > { %p3475_p8 = scmp.ne.s32.totalorder %s4398_s9, %s3474_s1  ;;  %s3478_s19 = sshll.u32 %s3595_s5, 4  ;;  %s3479_s19 = int_to_ptr.vmem [resolvable:$false] %s3478_s19 }
 0x28f   : > { %s3480_s24 = scalar_lea.vmem %s3479_s19, 4096  ;;  %p3481_p4 = scmp.lt.s32.totalorder %s4398_s9, %s3479_s19 }
 0x290   : > { %p3476_p6 = pnand %p3475_p8, %p4562_p5  ;;  %p3482_p7 = scmp.lt.s32.totalorder %s3480_s24, %s3474_s1 }
 0x292   : > { %p3477_p13 = pneg %p3476_p6  ;;  %p3483_p2 = por %p3482_p7, %p3481_p4 }
 0x294   : > { %p3484_p12 = pnand %p3483_p2, %p3477_p13 }
 0x296   : > { %3487 = shalt.err (!%p3484_p12)
}
 0x297   : > { %s3488_s12 = scalar_lea.hbm %s4396_s30, 2048  ;;  %s3492_s23 = scalar_lea.hbm %s4564_s29, 4096 }
 0x298   : > { %p3489_p11 = scmp.ne.s32.totalorder %s4396_s30, %s3488_s12  ;;  %p3493_p3 = scmp.lt.u32.totalorder %s4396_s30, %s4564_s29 }
 0x299   : > { %p3494_p10 = scmp.lt.u32.totalorder %s3492_s23, %s3488_s12  ;;  %p3496_p8 = scmp.lt.u32.totalorder %s3488_s12, %s4396_s30 }
 0x29a   : > { %p3490_p1 = pnand %p3489_p11, %p4562_p5 }
 0x29b   : > { %p3495_p9 = por %p3494_p10, %p3493_p3 }
 0x29c   : > { %p3491_p0 = pneg %p3490_p1 }
 0x29d   : > { %p3497_p6 = por %p3496_p8, %p3495_p9 }
 0x29f   : > { %p3498_p13 = pnand %p3497_p6, %p3491_p0 }
 0x2a1   : > { %3501 = shalt.err (!%p3498_p13)
}
 0x2a2   : > { %3019 = dma.vmem_to_hbm [thread:$0]  (%p4562_p5), %s4398_s9, 2048, %s4396_s30, %s4404_s22, %s3592_s27, %s3592_s27, %s3593_s25  }
 0x2a3 PF: > { %s4565_s7 = sld [smem:[#allocation30_spill]]  ;;  %s1975_s16 = sand.u32 1, %s3556_s17  }
 0x2a4   : > { %p4566_p4 = scmp.ne.s32.totalorder %s4539_s13, 0  ;;  %s1976_s20 = scalar_lea.sflag [#allocation4], %s1975_s16 }
 0x2a9   : > { %p4567_p7 = scmp.ge.s32.totalorder %s4565_s7, 2 }
 0x2ab   : > { %p3053_p2 = pnand %p4567_p7, %p4566_p4 }
 0x2ad   : > { %3547 = dma.done.wait (!%p3053_p2), %s1976_s20, 2048  }
 0x2ae   : > { %3549 = vsyncadd (!%p3053_p2), %s1976_s20, 4294965248  ;;  %s4568_s28 = sadd.s32 4294967294, %s4565_s7  }
 0x2af   : > { %s1984_s1 = sand.u32 1, %s4568_s28  }
 0x2b0   : > { %s1985_s5 = scalar_lea.sflag [#allocation19], %s1984_s1 }
 0x2b1   : > { %3551 = dma.done.wait (!%p3053_p2), %s1985_s5, 4096  }
 0x2b2   : > { %3553 = vsyncadd (!%p3053_p2), %s1985_s5, 4294963200  ;;  %s37_s22 = sadd.s32 1, %s4565_s7   ;;  %s4569_s27 = sld [smem:[#allocation28_spill]] }
 0x2b3   : > { %p34_p5 = scmp.ge.s32.totalorder %s37_s22, 4   ;;  %s4570_s19 = sld [smem:[#allocation33_spill]] }
 0x2b4   : > { %s4571_s25 = sld [smem:[#allocation32_spill]]  ;;  %s4572_s17 = smov %s3560_s18 }
 0x2b5   : > { %s4574_s20 = smov %s3572_s21  ;;  %36 = sbr.rel (!%p34_p5) target bundleno = 21 (0x15), region = 181 }
 0x2b8   : > { %s4573_s18 = smov %s4569_s27 }
 0x2ba   : > { %s4575_s21 = smov %s4571_s25 }
 0x2bc   :  { %1999 = vsyncpa [#allocation3], 1 }
 0x2bd   :  { %2001 = vsyncpa [#allocation3 + $0x1], 1 }
 0x2be   :  { %2002 = vsyncpa [#allocation6], 1 }
 0x2bf   :  { %2004 = vsyncpa [#allocation6 + $0x1], 1 }
 0x2c0   :  { %2005 = vsyncpa [#allocation9], 1 }
 0x2c1   :  { %2006 = vsyncpa [#allocation12], 1 }
 0x2c2   :  { %2007 = vsyncpa [#allocation15], 1 }
 0x2c3   :  { %2008 = vsyncpa [#allocation4], 1 }
 0x2c4   :  { %2010 = vsyncpa [#allocation4 + $0x1], 1 }
 0x2c5   :  { %2011 = vsyncpa [#allocation19], 1 }
 0x2c6   :  { %2013 = vsyncpa [#allocation19 + $0x1], 1 }

</bundles_post_ra>
